<compile_context>
chip_gen: v7x
topology: tpu7x:2x2x1
jax: 0.10.0
libtpu: 0.0.40
codegen_flags: <defaults>
</compile_context>

<pallas_src>
import functools
import math

import jax
import jax.numpy as jnp
from jax import lax
from jax.experimental import pallas as pl
from jax.experimental.pallas import tpu as pltpu


def _int_pow(x, e):
    """x ** e for positive integer e via multiply chain (VALU only, no pow/EUP)."""
    result = None
    base = x
    while e > 0:
        if e & 1:
            result = base if result is None else result * base
        e >>= 1
        if e:
            base = base * base
    return result


def _p_norm_over_f(diff, p):
    """diff: (n_chunk, F, tS) f32 -> (n_chunk, tS) f32, reduce over axis=1 (F)."""
    if p == 2:
        return jnp.sqrt(jnp.sum(diff * diff, axis=1))
    if p == 1:
        return jnp.sum(jnp.abs(diff), axis=1)
    if isinstance(p, float) and math.isinf(p):
        return jnp.max(jnp.abs(diff), axis=1)          # Chebyshev
    if isinstance(p, int) and p >= 1:
        ad = jnp.abs(diff)
        return jnp.sum(_int_pow(ad, p), axis=1) ** (1.0 / p)
    # General float p: factor out the max so |diff|^p cannot overflow/underflow.
    ad = jnp.abs(diff)
    amax = jnp.max(ad, axis=1, keepdims=True)
    scaled = ad / jnp.maximum(amax, jnp.float32(1e-30))
    return amax[:, 0, :] * (jnp.sum(scaled ** p, axis=1) ** (1.0 / p))


def _reldist_kernel(x_ref, a_ref, o_ref, *, p, n_chunk):
    # x_ref: (tN, F, tS)   a_ref: (M, F, tS)   o_ref: (tN, M, tS); lanes = samples.
    M = a_ref.shape[0]
    tN = x_ref.shape[0]
    a = a_ref[...].astype(jnp.float32)                 # small; resident across chunks

    num_chunks = tN // n_chunk

    @pl.loop(0, num_chunks)
    def _(c):
        n0 = pl.multiple_of(c * n_chunk, n_chunk)
        # Chunk of x is loaded (and upcast) once and reused for all M anchors.
        xc = x_ref[pl.ds(n0, n_chunk), :, :].astype(jnp.float32)   # (n_chunk, F, tS)
        rows = [_p_norm_over_f(xc - a[m][None, :, :], p) for m in range(M)]
        out_chunk = jnp.stack(rows, axis=1)                        # (n_chunk, M, tS)
        # One full-minor-tile store per chunk (unmasked vst, not per-anchor rows).
        o_ref[pl.ds(n0, n_chunk), :, :] = out_chunk.astype(o_ref.dtype)


def _vmem_budget():
    """(block+temp budget bytes, vmem_limit_bytes) per TPU generation."""
    kind = ""
    try:
        kind = jax.devices()[0].device_kind.lower()
    except Exception:
        pass
    if ("v4" in kind) or ("v5" in kind) or ("v6" in kind):
        # 128 MiB physical VMEM: larger blocks amortize per-step overhead.
        return 64 * (1 << 20), 96 * (1 << 20)
    # v7x (64 MiB physical VMEM) and unknown devices: stay conservative.
    return 32 * (1 << 20), 48 * (1 << 20)


def _candidates(dim, prefs):
    cands = [t for t in prefs if dim % t == 0]
    if not cands:
        # Non-divisible: rely on pl.cdiv grid + masked tail block.
        cands = [t for t in prefs if t < dim]
    if not cands:
        cands = [dim]   # whole extent (satisfies the "= full dim" rule)
    return cands        # descending


def _select_tiles(N, F, S, M, in_bytes, out_bytes, budget):
    s_cands = _candidates(S, (1024, 512, 256, 128))
    n_cands = _candidates(N, (512, 256, 128, 64, 32, 16, 8))

    def need(tN, tS):
        chunk = 8 if tN % 8 == 0 else tN
        blocks = 2 * (tN * F * in_bytes + M * F * in_bytes + tN * M * out_bytes) * tS
        temps = (M * F + 3 * chunk * F + 2 * chunk * M) * 4 * tS
        return blocks + temps

    tN, tS = n_cands[-1], s_cands[-1]
    found = False
    for cs in s_cands:                 # prefer the widest lane slab that fits
        for cn in n_cands:
            if need(cn, cs) <= budget:
                tN, tS = cn, cs
                found = True
                break
        if found:
            break

    # v7x has 2 TensorCores: ensure >= 2 blocks along a parallel axis when possible.
    if pl.cdiv(N, tN) * pl.cdiv(S, tS) < 2:
        for cn in n_cands:
            if cn < tN and pl.cdiv(N, cn) >= 2:
                tN = cn
                break
    return tN, tS


def rel_dist(x, anchors, n_anchors, p=2):
    """out[n, m, s] = || x[n,:,s] - anchors[m,:,s] ||_p  ->  (N, n_anchors, S).

    n_anchors and p must be static Python values. p may be 1, 2, any positive
    int, a positive float, or float('inf') (Chebyshev), matching torch.cdist.
    """
    N, F, S = x.shape
    M_total = anchors.shape[0]
    n_anchors = int(n_anchors)
    assert 1 <= n_anchors <= M_total
    M = n_anchors

    in_bytes = jnp.dtype(x.dtype).itemsize
    budget, vmem_limit = _vmem_budget()
    tN, tS = _select_tiles(N, F, S, M, in_bytes, in_bytes, budget)
    n_chunk = 8 if tN % 8 == 0 else tN

    # s outer, n inner: the anchor block (index depends only on s) stays
    # VMEM-resident across the whole N sweep.
    grid = (pl.cdiv(S, tS), pl.cdiv(N, tN))

    if p == 1 or (isinstance(p, float) and math.isinf(p)):
        transc = 0
    elif p == 2 or isinstance(p, int):
        transc = N * M * S                            # sqrt / final root only
    else:
        transc = 2 * N * M * F * S + N * M * S        # pow = exp+log per element
    cost = pl.CostEstimate(
        flops=3 * N * M * F * S,
        transcendentals=transc,
        bytes_accessed=(N * F * S + M * F * S + N * M * S) * in_bytes,
    )

    out = pl.pallas_call(
        functools.partial(_reldist_kernel, p=p, n_chunk=n_chunk),
        out_shape=jax.ShapeDtypeStruct((N, M, S), x.dtype),
        grid_spec=pltpu.PrefetchScalarGridSpec(
            num_scalar_prefetch=0,
            grid=grid,
            in_specs=[
                pl.BlockSpec((tN, F, tS), lambda s, n: (n, 0, s)),
                # Full anchors array; the BlockSpec windows the first n_anchors
                # rows (block 0 only), so no wrapper-side slice copy.
                pl.BlockSpec((M, F, tS), lambda s, n: (0, 0, s)),
            ],
            out_specs=pl.BlockSpec((tN, M, tS), lambda s, n: (n, 0, s)),
        ),
        compiler_params=pltpu.CompilerParams(
            dimension_semantics=("parallel", "parallel"),
            vmem_limit_bytes=vmem_limit,
        ),
        cost_estimate=cost,
    )(x, anchors)
    return out


if __name__ == "__main__":
    key = jax.random.PRNGKey(0)
    k_x, k_a = jax.random.split(key)

    N, F, S = 8, 32, 8          # points, in_features, samples
    M_total, n_anchors = 6, 4

    x = jax.random.normal(k_x, (N, F, S), dtype=jnp.float32)
    anchors = jax.random.normal(k_a, (M_total, F, S), dtype=jnp.float32)

    a_sel = anchors[:n_anchors]
    diff = x[:, None, :, :] - a_sel[None, :, :, :]            # (N, M, F, S)

    # p = 2 (module default)
    out2 = jax.block_until_ready(rel_dist(x, anchors, n_anchors, p=2))
    assert out2.shape == (N, n_anchors, S), out2.shape
    ref2 = jnp.sqrt(jnp.sum(diff * diff, axis=2))
    assert jnp.allclose(out2, ref2, atol=1e-4, rtol=1e-4)

    # p = 3 (integer fast path: multiply chain, no per-element pow)
    out3 = jax.block_until_ready(rel_dist(x, anchors, n_anchors, p=3))
    ref3 = jnp.sum(jnp.abs(diff) ** 3, axis=2) ** (1.0 / 3.0)
    assert jnp.allclose(out3, ref3, atol=1e-3, rtol=1e-3)

    print("KERNEL_OK")
</pallas_src>

<mosaic_0001>
module attributes {stable_mosaic.version = 11 : i64} {
  func.func @_reldist_kernel(%arg0: i32, %arg1: i32, %arg2: memref<8x32x8xf32, #tpu.memory_space<vmem>>, %arg3: memref<4x32x8xf32, #tpu.memory_space<vmem>>, %arg4: memref<8x4x8xf32, #tpu.memory_space<vmem>>) attributes {dimension_semantics = [#tpu.dimension_semantics<parallel>, #tpu.dimension_semantics<parallel>], iteration_bounds = array<i64: 1, 1>, scalar_prefetch = 0 : i64, scratch_operands = 0 : i64, tpu.core_type = #tpu.core_type<tc>, window_params = [{transform_indices = @transform_0, window_bounds = array<i64: 8, 32, 8>}, {transform_indices = @transform_1, window_bounds = array<i64: 4, 32, 8>}, {transform_indices = @transform_2, window_bounds = array<i64: 8, 4, 8>}]} {
    %c0 = arith.constant 0 : index
    %c0_0 = arith.constant 0 : index
    %c0_1 = arith.constant 0 : index
    %0 = vector.load %arg3[%c0, %c0_0, %c0_1] : memref<4x32x8xf32, #tpu.memory_space<vmem>>, vector<4x32x8xf32>
    %c0_i32 = arith.constant 0 : i32
    %c1_i32 = arith.constant 1 : i32
    %1 = arith.muli %c0_i32, %c1_i32 : i32
    %c0_i32_2 = arith.constant 0 : i32
    %2 = arith.addi %c0_i32_2, %1 : i32
    %c8_i32 = arith.constant 8 : i32
    %3 = arith.muli %2, %c8_i32 : i32
    %4 = tpu.assume_multiple %3, 8 : i32
    %5 = arith.index_cast %4 : i32 to index
    %c0_3 = arith.constant 0 : index
    %c0_4 = arith.constant 0 : index
    %6 = vector.load %arg2[%5, %c0_3, %c0_4] : memref<8x32x8xf32, #tpu.memory_space<vmem>>, vector<8x32x8xf32>
    %7 = vector.extract_strided_slice %0 {offsets = [0, 0, 0], sizes = [1, 32, 8], strides = [1, 1, 1]} : vector<4x32x8xf32> to vector<1x32x8xf32>
    %8 = vector.shape_cast %7 : vector<1x32x8xf32> to vector<32x8xf32>
    %9 = vector.shape_cast %8 : vector<32x8xf32> to vector<1x32x8xf32>
    %10 = vector.broadcast %9 : vector<1x32x8xf32> to vector<8x32x8xf32>
    %11 = arith.subf %6, %10 : vector<8x32x8xf32>
    %12 = arith.mulf %11, %11 : vector<8x32x8xf32>
    %cst = arith.constant dense<0.000000e+00> : vector<8x8xf32>
    %13 = vector.multi_reduction <add>, %12, %cst [1] : vector<8x32x8xf32> to vector<8x8xf32>
    %14 = math.sqrt %13 : vector<8x8xf32>
    %15 = vector.extract_strided_slice %0 {offsets = [1, 0, 0], sizes = [1, 32, 8], strides = [1, 1, 1]} : vector<4x32x8xf32> to vector<1x32x8xf32>
    %16 = vector.shape_cast %15 : vector<1x32x8xf32> to vector<32x8xf32>
    %17 = vector.shape_cast %16 : vector<32x8xf32> to vector<1x32x8xf32>
    %18 = vector.broadcast %17 : vector<1x32x8xf32> to vector<8x32x8xf32>
    %19 = arith.subf %6, %18 : vector<8x32x8xf32>
    %20 = arith.mulf %19, %19 : vector<8x32x8xf32>
    %cst_5 = arith.constant dense<0.000000e+00> : vector<8x8xf32>
    %21 = vector.multi_reduction <add>, %20, %cst_5 [1] : vector<8x32x8xf32> to vector<8x8xf32>
    %22 = math.sqrt %21 : vector<8x8xf32>
    %23 = vector.extract_strided_slice %0 {offsets = [2, 0, 0], sizes = [1, 32, 8], strides = [1, 1, 1]} : vector<4x32x8xf32> to vector<1x32x8xf32>
    %24 = vector.shape_cast %23 : vector<1x32x8xf32> to vector<32x8xf32>
    %25 = vector.shape_cast %24 : vector<32x8xf32> to vector<1x32x8xf32>
    %26 = vector.broadcast %25 : vector<1x32x8xf32> to vector<8x32x8xf32>
    %27 = arith.subf %6, %26 : vector<8x32x8xf32>
    %28 = arith.mulf %27, %27 : vector<8x32x8xf32>
    %cst_6 = arith.constant dense<0.000000e+00> : vector<8x8xf32>
    %29 = vector.multi_reduction <add>, %28, %cst_6 [1] : vector<8x32x8xf32> to vector<8x8xf32>
    %30 = math.sqrt %29 : vector<8x8xf32>
    %31 = vector.extract_strided_slice %0 {offsets = [3, 0, 0], sizes = [1, 32, 8], strides = [1, 1, 1]} : vector<4x32x8xf32> to vector<1x32x8xf32>
    %32 = vector.shape_cast %31 : vector<1x32x8xf32> to vector<32x8xf32>
    %33 = vector.shape_cast %32 : vector<32x8xf32> to vector<1x32x8xf32>
    %34 = vector.broadcast %33 : vector<1x32x8xf32> to vector<8x32x8xf32>
    %35 = arith.subf %6, %34 : vector<8x32x8xf32>
    %36 = arith.mulf %35, %35 : vector<8x32x8xf32>
    %cst_7 = arith.constant dense<0.000000e+00> : vector<8x8xf32>
    %37 = vector.multi_reduction <add>, %36, %cst_7 [1] : vector<8x32x8xf32> to vector<8x8xf32>
    %38 = math.sqrt %37 : vector<8x8xf32>
    %39 = vector.shape_cast %14 : vector<8x8xf32> to vector<8x1x8xf32>
    %40 = vector.shape_cast %22 : vector<8x8xf32> to vector<8x1x8xf32>
    %41 = vector.shape_cast %30 : vector<8x8xf32> to vector<8x1x8xf32>
    %42 = vector.shape_cast %38 : vector<8x8xf32> to vector<8x1x8xf32>
    %43 = tpu.concatenate %39, %40, %41, %42 in 1 : vector<8x1x8xf32>, vector<8x1x8xf32>, vector<8x1x8xf32>, vector<8x1x8xf32> -> vector<8x4x8xf32>
    %44 = arith.index_cast %4 : i32 to index
    %c0_8 = arith.constant 0 : index
    %c0_9 = arith.constant 0 : index
    %45 = vector.load %arg4[%44, %c0_8, %c0_9] : memref<8x4x8xf32, #tpu.memory_space<vmem>>, vector<8x4x8xf32>
    tpu.vector_store %arg4[%44, %c0_8, %c0_9], %43 {strides = array<i32>} : memref<8x4x8xf32, #tpu.memory_space<vmem>>, vector<8x4x8xf32>,
    %c1_i32_10 = arith.constant 1 : i32
    return
  }
  func.func @transform_0(%arg0: i32, %arg1: i32) -> (i32, i32, i32) {
    %c0_i32 = arith.constant 0 : i32
    %c0_i32_0 = arith.constant 0 : i32
    return %arg1, %c0_i32, %arg0 : i32, i32, i32
  }
  func.func @transform_1(%arg0: i32, %arg1: i32) -> (i32, i32, i32) {
    %c0_i32 = arith.constant 0 : i32
    %c0_i32_0 = arith.constant 0 : i32
    %c0_i32_1 = arith.constant 0 : i32
    return %c0_i32, %c0_i32_0, %arg0 : i32, i32, i32
  }
  func.func @transform_2(%arg0: i32, %arg1: i32) -> (i32, i32, i32) {
    %c0_i32 = arith.constant 0 : i32
    %c0_i32_0 = arith.constant 0 : i32
    return %arg1, %c0_i32, %arg0 : i32, i32, i32
  }
}

</mosaic_0001>

<bundles_post_ra>
// kernel: tpu_custom_call.1
= control target key start
LH: loop header
LB: loop body
LE: loop exit
PB: predicated region body
PF: predicated region fallthrough
CT: control target
= control target key end

     0   :  { %7 = vsyncpa [#allocation3], 0  ;;  %vm126_vm0 = vcmask 64512   ;;  %s2485_s0 = inlined_call_operand.vmem [shape: f32[8,32,8], index: 0, kind: input, shape index: {}]   ;;  %s2486_s1 = inlined_call_operand.vmem [shape: f32[6,32,8], index: 1, kind: input, shape index: {}]   ;;  %s2487_s2 = inlined_call_operand.hbm [shape: f32[8,4,8], index: 2, kind: output, shape index: {}]  }
   0x1   :  { %v1157_v0 = vld [vmem:[%s2486_s1] sm:$0xff]  ;;  %v1162_v1 = vld [vmem:[%s2486_s1 + $0x8] sm:$0xff]  ;;  %v1167_v2 = vld [vmem:[%s2486_s1 + $0x10] sm:$0xff] }
   0x2   :  { %v1172_v3 = vld [vmem:[%s2486_s1 + $0x18] sm:$0xff]  ;;  %v1177_v4 = vld [vmem:[%s2485_s0] sm:$0xff]  ;;  %v1182_v5 = vld [vmem:[%s2485_s0 + $0x8] sm:$0xff] }
   0x3   :  { %2540 = vst [vmem:[#allocation5_spill] sm:$0xff] %v1182_v5  ;;  %v1187_v6 = vld [vmem:[%s2485_s0 + $0x10] sm:$0xff]  ;;  %v1192_v7 = vld [vmem:[%s2485_s0 + $0x18] sm:$0xff]  ;;  %v62_v8 = vsub.f32 %v1177_v4, %v1157_v0  ;;  %v1199_v9 = vld [vmem:[%s2485_s0 + $0x20] sm:$0xff]  ;;  %v63_v12 = vsub.f32 %v1182_v5, %v1162_v1 }
   0x4   :  { %2541 = vst [vmem:[#allocation6_spill] sm:$0xff] %v1187_v6  ;;  %2542 = vst [vmem:[#allocation7_spill] sm:$0xff] %v1192_v7  ;;  %v1204_v10 = vld [vmem:[%s2485_s0 + $0x28] sm:$0xff]  ;;  %v1209_v11 = vld [vmem:[%s2485_s0 + $0x30] sm:$0xff]  ;;  %v64_v16 = vsub.f32 %v1187_v6, %v1167_v2  ;;  %v65_v20 = vsub.f32 %v1192_v7, %v1172_v3  ;;  %v66_v24 = vsub.f32 %v1199_v9, %v1157_v0 }
   0x5   :  { %2543 = vst [vmem:[#allocation8_spill] sm:$0xff] %v1199_v9  ;;  %2544 = vst [vmem:[#allocation9_spill] sm:$0xff] %v1204_v10  ;;  %v1216_v13 = vld [vmem:[%s2485_s0 + $0x38] sm:$0xff]  ;;  %v1221_v14 = vld [vmem:[%s2485_s0 + $0x40] sm:$0xff]  ;;  %v67_v25 = vsub.f32 %v1204_v10, %v1162_v1  ;;  %v68_v26 = vsub.f32 %v1209_v11, %v1167_v2  ;;  %v1268_v27 = vmul.f32 %v62_v8, %v62_v8 }
   0x6   :  { %2545 = vst [vmem:[#allocation10_spill] sm:$0xff] %v1209_v11  ;;  %2546 = vst [vmem:[#allocation11_spill] sm:$0xff] %v1216_v13  ;;  %v1226_v15 = vld [vmem:[%s2485_s0 + $0x48] sm:$0xff]  ;;  %v1233_v17 = vld [vmem:[%s2485_s0 + $0x50] sm:$0xff]  ;;  %v69_v31 = vsub.f32 %v1216_v13, %v1172_v3  ;;  %v70_v32 = vsub.f32 %v1221_v14, %v1157_v0  ;;  %v95_v34 = vmul.f32 %v63_v12, %v63_v12 }
   0x7   :  { %2547 = vst [vmem:[#allocation12_spill] sm:$0xff] %v1221_v14  ;;  %2548 = vst [vmem:[#allocation13_spill] sm:$0xff] %v1226_v15  ;;  %v1238_v18 = vld [vmem:[%s2485_s0 + $0x58] sm:$0xff]  ;;  %v1243_v19 = vld [vmem:[%s2485_s0 + $0x60] sm:$0xff]  ;;  %v71_v33 = vsub.f32 %v1226_v15, %v1162_v1  ;;  %v72_v38 = vsub.f32 %v1233_v17, %v1167_v2  ;;  %v96_v41 = vmul.f32 %v64_v16, %v64_v16 }
   0x8   :  { %2549 = vst [vmem:[#allocation14_spill] sm:$0xff] %v1233_v17  ;;  %2550 = vst [vmem:[#allocation15_spill] sm:$0xff] %v1238_v18  ;;  %v1250_v21 = vld [vmem:[%s2485_s0 + $0x68] sm:$0xff]  ;;  %v1255_v22 = vld [vmem:[%s2485_s0 + $0x70] sm:$0xff]  ;;  %v73_v39 = vsub.f32 %v1238_v18, %v1172_v3  ;;  %v74_v40 = vsub.f32 %v1243_v19, %v1157_v0  ;;  %v97_v48 = vmul.f32 %v65_v20, %v65_v20 }
   0x9   :  { %2551 = vst [vmem:[#allocation16_spill] sm:$0xff] %v1243_v19  ;;  %2552 = vst [vmem:[#allocation17_spill] sm:$0xff] %v1250_v21  ;;  %v1260_v23 = vld [vmem:[%s2485_s0 + $0x78] sm:$0xff]  ;;  %v1273_v28 = vld [vmem:[%s2485_s0 + $0x80] sm:$0xff]  ;;  %v75_v45 = vsub.f32 %v1250_v21, %v1162_v1  ;;  %v76_v46 = vsub.f32 %v1255_v22, %v1167_v2  ;;  %v98_v55 = vmul.f32 %v66_v24, %v66_v24 }
   0xa   :  { %2553 = vst [vmem:[#allocation18_spill] sm:$0xff] %v1255_v22  ;;  %2554 = vst [vmem:[#allocation19_spill] sm:$0xff] %v1260_v23  ;;  %v1278_v29 = vld [vmem:[%s2485_s0 + $0x88] sm:$0xff]  ;;  %v1283_v30 = vld [vmem:[%s2485_s0 + $0x90] sm:$0xff]  ;;  %v77_v47 = vsub.f32 %v1260_v23, %v1172_v3  ;;  %v78_v52 = vsub.f32 %v1273_v28, %v1157_v0  ;;  %v99_v62 = vmul.f32 %v67_v25, %v67_v25 }
   0xb   :  { %2555 = vst [vmem:[#allocation20_spill] sm:$0xff] %v1273_v28  ;;  %2556 = vst [vmem:[#allocation21_spill] sm:$0xff] %v1278_v29  ;;  %v1294_v35 = vld [vmem:[%s2485_s0 + $0x98] sm:$0xff]  ;;  %v1299_v36 = vld [vmem:[%s2485_s0 + $0xa0] sm:$0xff]  ;;  %v79_v53 = vsub.f32 %v1278_v29, %v1162_v1  ;;  %v80_v54 = vsub.f32 %v1283_v30, %v1167_v2  ;;  %v100_v16 = vmul.f32 %v68_v26, %v68_v26 }
   0xc   :  { %2557 = vst [vmem:[#allocation22_spill] sm:$0xff] %v1283_v30  ;;  %2558 = vst [vmem:[#allocation23_spill] sm:$0xff] %v1294_v35  ;;  %v1304_v37 = vld [vmem:[%s2485_s0 + $0xa8] sm:$0xff]  ;;  %v1315_v42 = vld [vmem:[%s2485_s0 + $0xb0] sm:$0xff]  ;;  %v81_v59 = vsub.f32 %v1294_v35, %v1172_v3  ;;  %v82_v60 = vsub.f32 %v1299_v36, %v1157_v0  ;;  %v106_v35 = vmul.f32 %v74_v40, %v74_v40  ;;  %v140_v40 = vsel %vm126_vm0, %v98_v55, 0.0 }
   0xd   :  { %2559 = vst [vmem:[#allocation24_spill] sm:$0xff] %v1299_v36  ;;  %2560 = vst [vmem:[#allocation25_spill] sm:$0xff] %v1304_v37  ;;  %v1320_v43 = vld [vmem:[%s2485_s0 + $0xb8] sm:$0xff]  ;;  %v1325_v44 = vld [vmem:[%s2485_s0 + $0xc0] sm:$0xff]  ;;  %v83_v61 = vsub.f32 %v1304_v37, %v1162_v1  ;;  %v84_v63 = vsub.f32 %v1315_v42, %v1167_v2  ;;  %v101_v37 = vmul.f32 %v69_v31, %v69_v31 }
   0xe   :  { %2561 = vst [vmem:[#allocation26_spill] sm:$0xff] %v1315_v42  ;;  %2562 = vst [vmem:[#allocation27_spill] sm:$0xff] %v1320_v43  ;;  %v1336_v49 = vld [vmem:[%s2485_s0 + $0xc8] sm:$0xff]  ;;  %v1341_v50 = vld [vmem:[%s2485_s0 + $0xd0] sm:$0xff]  ;;  %v85_v8 = vsub.f32 %v1320_v43, %v1172_v3  ;;  %v86_v12 = vsub.f32 %v1325_v44, %v1157_v0  ;;  %v104_v43 = vmul.f32 %v72_v38, %v72_v38  ;;  %v132_v38 = vsel %vm126_vm0, %v97_v48, 0.0 }
   0xf   :  { %2563 = vst [vmem:[#allocation28_spill] sm:$0xff] %v1325_v44  ;;  %2564 = vst [vmem:[#allocation29_spill] sm:$0xff] %v1336_v49  ;;  %v1346_v51 = vld [vmem:[%s2485_s0 + $0xd8] sm:$0xff]  ;;  %v1357_v56 = vld [vmem:[%s2485_s0 + $0xe0] sm:$0xff]  ;;  %v87_v20 = vsub.f32 %v1336_v49, %v1162_v1  ;;  %v1385_v24 = vsub.f32 %v1341_v50, %v1167_v2  ;;  %v102_v49 = vmul.f32 %v70_v32, %v70_v32  ;;  %v128_v32 = vsel %vm126_vm0, %v95_v34, 0.0 }
  0x10   :  { %2565 = vst [vmem:[#allocation30_spill] sm:$0xff] %v1341_v50  ;;  %2566 = vst [vmem:[#allocation31_spill] sm:$0xff] %v1346_v51  ;;  %v1362_v57 = vld [vmem:[%s2485_s0 + $0xe8] sm:$0xff]  ;;  %v1367_v58 = vld [vmem:[%s2485_s0 + $0xf0] sm:$0xff]  ;;  %v1389_v25 = vsub.f32 %v1346_v51, %v1172_v3  ;;  %v1393_v42 = vsub.f32 %v1357_v56, %v1157_v0  ;;  %v103_v50 = vmul.f32 %v71_v33, %v71_v33  ;;  %v130_v33 = vsel %vm126_vm0, %v96_v41, 0.0 }
  0x11   :  { %2567 = vst [vmem:[#allocation32_spill] sm:$0xff] %v1357_v56  ;;  %2568 = vst [vmem:[#allocation33_spill] sm:$0xff] %v1362_v57  ;;  %v1397_v44 = vsub.f32 %v1362_v57, %v1162_v1  ;;  %v1401_v26 = vsub.f32 %v1367_v58, %v1167_v2  ;;  %v105_v36 = vmul.f32 %v73_v39, %v73_v39  ;;  %v127_v2 = vsel %vm126_vm0, %v1268_v27, 0.0 }
  0x12   :  { %2569 = vst [vmem:[#allocation34_spill] sm:$0xff] %v1367_v58  ;;  %v107_v51 = vmul.f32 %v75_v45, %v75_v45  ;;  %v108_v30 = vmul.f32 %v76_v46, %v76_v46  ;;  %v109_v31 = vmul.f32 %v77_v47, %v77_v47  ;;  %v110_v29 = vmul.f32 %v78_v52, %v78_v52 }
  0x13   :  { %v111_v28 = vmul.f32 %v79_v53, %v79_v53  ;;  %v112_v0 = vmul.f32 %v80_v54, %v80_v54  ;;  %v113_v56 = vmul.f32 %v81_v59, %v81_v59  ;;  %v114_v23 = vmul.f32 %v82_v60, %v82_v60 }
  0x14   :  { %v115_v22 = vmul.f32 %v83_v61, %v83_v61  ;;  %v116_v1 = vmul.f32 %v84_v63, %v84_v63  ;;  %v117_v57 = vmul.f32 %v85_v8, %v85_v8  ;;  %v118_v21 = vmul.f32 %v86_v12, %v86_v12 }
  0x15   :  { %v129_v39 = vadd.f32 %v128_v32, %v127_v2  ;;  %v141_v45 = vsel %vm126_vm0, %v99_v62, 0.0  ;;  %v143_v46 = vsel %vm126_vm0, %v100_v16, 0.0  ;;  %v145_v52 = vsel %vm126_vm0, %v101_v37, 0.0 }
  0x16   :  { %v142_v47 = vadd.f32 %v141_v45, %v140_v40  ;;  %v153_v53 = vsel %vm126_vm0, %v102_v49, 0.0  ;;  %v154_v27 = vsel %vm126_vm0, %v103_v50, 0.0  ;;  %v156_v41 = vsel %vm126_vm0, %v104_v43, 0.0 }
  0x17   :  { %v131_v54 = vadd.f32 %v130_v33, %v129_v39  ;;  %v155_v34 = vadd.f32 %v154_v27, %v153_v53  ;;  %v158_v48 = vsel %vm126_vm0, %v105_v36, 0.0  ;;  %v166_v55 = vsel %vm126_vm0, %v106_v35, 0.0 }
  0x18   :  { %v144_v59 = vadd.f32 %v143_v46, %v142_v47  ;;  %v167_v60 = vsel %vm126_vm0, %v107_v51, 0.0  ;;  %v169_v61 = vsel %vm126_vm0, %v108_v30, 0.0  ;;  %v171_v49 = vsel %vm126_vm0, %v109_v31, 0.0 }
  0x19   :  { %v133_v62 = vadd.f32 %v132_v38, %v131_v54  ;;  %v157_v63 = vadd.f32 %v156_v41, %v155_v34  ;;  %v168_v37 = vadd.f32 %v167_v60, %v166_v55  ;;  %v179_v50 = vsel %vm126_vm0, %v110_v29, 0.0 }
  0x1a   :  { %v146_v8 = vadd.f32 %v145_v52, %v144_v59  ;;  %v180_v12 = vsel %vm126_vm0, %v111_v28, 0.0  ;;  %v182_v43 = vsel %vm126_vm0, %v112_v0, 0.0  ;;  %v119_v32 = vmul.f32 %v87_v20, %v87_v20  ;;  %v1429_v28 = vld [vmem:[%s2485_s0 + $0xf8] sm:$0xff] }
  0x1b   :  { %v134_v36 = vrot.slane %v133_v62, 4  ;;  %v159_v16 = vadd.f32 %v158_v48, %v157_v63  ;;  %v170_v2 = vadd.f32 %v169_v61, %v168_v37  ;;  %v181_v35 = vadd.f32 %v180_v12, %v179_v50  ;;  %2570 = vst [vmem:[#allocation35_spill] sm:$0xff] %v1429_v28 }
  0x1c   :  { %v184_v51 = vsel %vm126_vm0, %v113_v56, 0.0  ;;  %v192_v30 = vsel %vm126_vm0, %v114_v23, 0.0  ;;  %v193_v33 = vsel %vm126_vm0, %v115_v22, 0.0  ;;  %v147_v31 = vrot.slane %v146_v8, 4 }
  0x1d   :  { %v135_v38 = vadd.f32 %v134_v36, %v133_v62  ;;  %v172_v39 = vadd.f32 %v171_v49, %v170_v2  ;;  %v183_v40 = vadd.f32 %v182_v43, %v181_v35  ;;  %v120_v29 = vmul.f32 %v1385_v24, %v1385_v24 }
  0x1e   :  { %v121_v20 = vmul.f32 %v1389_v25, %v1389_v25  ;;  %v194_v56 = vadd.f32 %v193_v33, %v192_v30  ;;  %v195_v23 = vsel %vm126_vm0, %v116_v1, 0.0  ;;  %v160_v22 = vrot.slane %v159_v16, 4 }
  0x1f   :  { %v136_v0 = vrot.slane %v135_v38, 2  ;;  %v185_v45 = vadd.f32 %v184_v51, %v183_v40  ;;  %v197_v46 = vsel %vm126_vm0, %v117_v57, 0.0  ;;  %v173_v47 = vrot.slane %v172_v39, 4 }
  0x20   :  { %v196_v52 = vadd.f32 %v195_v23, %v194_v56  ;;  %v205_v53 = vsel %vm126_vm0, %v118_v21, 0.0  ;;  %v206_v27 = vsel %vm126_vm0, %v119_v32, 0.0  ;;  %v93_v24 = vsub.f32 %v1429_v28, %v1172_v3 }
  0x21   :  { %v122_v25 = vmul.f32 %v1393_v42, %v1393_v42  ;;  %v148_v54 = vadd.f32 %v147_v31, %v146_v8  ;;  %v186_v34 = vrot.slane %v185_v45, 4  ;;  %v137_v1 = vadd.f32 %v136_v0, %v135_v38 }
  0x22   :  { %v198_v41 = vadd.f32 %v197_v46, %v196_v52  ;;  %v207_v48 = vadd.f32 %v206_v27, %v205_v53  ;;  %v208_v59 = vsel %vm126_vm0, %v120_v29, 0.0  ;;  %v123_v57 = vmul.f32 %v1397_v44, %v1397_v44 }
  0x23   :  { %v124_v21 = vmul.f32 %v1401_v26, %v1401_v26  ;;  %v161_v55 = vadd.f32 %v160_v22, %v159_v16  ;;  %v174_v60 = vadd.f32 %v173_v47, %v172_v39  ;;  %v210_v62 = vsel %vm126_vm0, %v121_v20, 0.0 }
  0x24   :  { %v199_v61 = vrot.slane %v198_v41, 4  ;;  %v209_v3 = vadd.f32 %v208_v59, %v207_v48  ;;  %v125_v42 = vmul.f32 %v93_v24, %v93_v24  ;;  %v149_v63 = vrot.slane %v148_v54, 2 }
  0x25   :  { %v187_v37 = vadd.f32 %v186_v34, %v185_v45  ;;  %v138_v49 = vrot.slane %v137_v1, 1  ;;  %v218_v12 = vsel %vm126_vm0, %v122_v25, 0.0  ;;  %v162_v43 = vrot.slane %v161_v55, 2  ;;  %v16_v34 = vld [vmem:[%s2486_s1 + $0x20] sm:$0xff] }
  0x26   :  { %v200_v8 = vadd.f32 %v199_v61, %v198_v41  ;;  %v211_v50 = vadd.f32 %v210_v62, %v209_v3  ;;  %v219_v44 = vsel %vm126_vm0, %v123_v57, 0.0  ;;  %v175_v36 = vrot.slane %v174_v60, 2  ;;  %v17_v57 = vld [vmem:[%s2486_s1 + $0x28] sm:$0xff] }
  0x27   :  { %v220_v26 = vadd.f32 %v219_v44, %v218_v12  ;;  %v221_v16 = vsel %vm126_vm0, %v124_v21, 0.0  ;;  %v150_v35 = vadd.f32 %v149_v63, %v148_v54  ;;  %v188_v32 = vrot.slane %v187_v37, 2  ;;  %v19_v63 = vld [vmem:[%s2486_s1 + $0x38] sm:$0xff] }
  0x28   :  { %v212_v2 = vrot.slane %v211_v50, 4  ;;  %v223_v51 = vsel %vm126_vm0, %v125_v42, 0.0  ;;  %v1453_v30 = vadd.f32 %v138_v49, %v137_v1  ;;  %v201_v33 = vrot.slane %v200_v8, 2  ;;  %v1466_v1 = vld [vmem:[%s2486_s1 + $0x40] sm:$0xff] }
  0x29   :  { %v222_v31 = vadd.f32 %v221_v16, %v220_v26  ;;  %v163_v39 = vadd.f32 %v162_v43, %v161_v55  ;;  %v176_v40 = vadd.f32 %v175_v36, %v174_v60  ;;  %v189_v56 = vadd.f32 %v188_v32, %v187_v37  ;;  %2571 = vst [vmem:[#allocation36_spill] sm:$0xff] %v1466_v1  ;;  %v18_v60 = vld [vmem:[%s2486_s1 + $0x30] sm:$0xff]  ;;  %v2581_v32 = vld [vmem:[#allocation24_spill] sm:$0xff]  ;;  %v2582_v43 = vld [vmem:[#allocation25_spill] sm:$0xff] }
  0x2a   :  { %v213_v38 = vadd.f32 %v212_v2, %v211_v50  ;;  %v151_v23 = vrot.slane %v150_v35, 1  ;;  %v202_v0 = vadd.f32 %v201_v33, %v200_v8  ;;  %1016 = vrsqrt.f32 %v1453_v30  ;;  %v2583_v50 = vld [vmem:[#allocation26_spill] sm:$0xff] }
  0x2b   :  { %v224_v20 = vadd.f32 %v223_v51, %v222_v31  ;;  %v164_v45 = vrot.slane %v163_v39, 1  ;;  %v177_v46 = vrot.slane %v176_v40, 1  ;;  %v190_v53 = vrot.slane %v189_v56, 1 }
  0x2c   :  { %v214_v29 = vrot.slane %v213_v38, 2  ;;  %v1456_v27 = vadd.f32 %v151_v23, %v150_v35  ;;  %v203_v24 = vrot.slane %v202_v0, 1  ;;  %v287_v3 = vsub.f32 %v1177_v4, %v16_v34 }
  0x2d   :  { %v225_v22 = vrot.slane %v224_v20, 4  ;;  %v1458_v54 = vadd.f32 %v164_v45, %v163_v39  ;;  %v1468_v41 = vadd.f32 %v177_v46, %v176_v40  ;;  %v1473_v21 = vadd.f32 %v190_v53, %v189_v56  ;;  %v2574_v56 = vld [vmem:[#allocation17_spill] sm:$0xff]  ;;  %v2576_v45 = vld [vmem:[#allocation19_spill] sm:$0xff] }
  0x2e   :  { %v215_v47 = vadd.f32 %v214_v29, %v213_v38  ;;  %v1475_v55 = vadd.f32 %v203_v24, %v202_v0  ;;  %1018 = vrsqrt.f32 %v1456_v27  ;;  %v1485_v62 = vsub.f32 %v1177_v4, %v1466_v1  ;;  %v2575_v0 = vld [vmem:[#allocation18_spill] sm:$0xff]  ;;  %v2578_v53 = vld [vmem:[#allocation21_spill] sm:$0xff] }
  0x2f   :  { %v226_v52 = vadd.f32 %v225_v22, %v224_v20  ;;  %1020 = vrsqrt.f32 %v1458_v54  ;;  %v288_v8 = vsub.f32 %v1182_v5, %v17_v57  ;;  %v289_v36 = vsub.f32 %v1187_v6, %v18_v60 }
  0x30   :  { %v216_v48 = vrot.slane %v215_v47, 1  ;;  %2572 = vst [vmem:[#allocation37_spill] sm:$0xff] %v1485_v62  ;;  %1022 = vrsqrt.f32 %v1468_v41  ;;  %v290_v16 = vsub.f32 %v1192_v7, %v19_v63  ;;  %v291_v35 = vsub.f32 %v1199_v9, %v16_v34  ;;  %v2584_v62 = vld [vmem:[#allocation27_spill] sm:$0xff] }
  0x31   :  { %v227_v25 = vrot.slane %v226_v52, 2  ;;  %1024 = vrsqrt.f32 %v1473_v21  ;;  %v292_v51 = vsub.f32 %v1204_v10, %v17_v57  ;;  %v293_v33 = vsub.f32 %v1209_v11, %v18_v60 }
  0x32   :  { %v1490_v37 = vadd.f32 %v216_v48, %v215_v47  ;;  %1026 = vrsqrt.f32 %v1475_v55  ;;  %v294_v38 = vsub.f32 %v1216_v13, %v19_v63  ;;  %v295_v31 = vsub.f32 %v1221_v14, %v16_v34  ;;  %v2577_v47 = vld [vmem:[#allocation20_spill] sm:$0xff]  ;;  %v2579_v48 = vld [vmem:[#allocation22_spill] sm:$0xff]  ;;  %v2590_v14 = vld [vmem:[#allocation33_spill] sm:$0xff] }
  0x33   :  { %v228_v59 = vadd.f32 %v227_v25, %v226_v52  ;;  %v296_v39 = vsub.f32 %v1226_v15, %v17_v57  ;;  %v297_v40 = vsub.f32 %v1233_v17, %v18_v60  ;;  %v298_v29 = vsub.f32 %v1238_v18, %v19_v63  ;;  %v2587_v18 = vld [vmem:[#allocation30_spill] sm:$0xff]  ;;  %v2588_v17 = vld [vmem:[#allocation31_spill] sm:$0xff]  ;;  %v2589_v15 = vld [vmem:[#allocation32_spill] sm:$0xff] }
  0x34   :  { %v1017_v42 = vpop.eup %1016  ;;  %1028 = vrsqrt.f32 %v1490_v37  ;;  %v299_v20 = vsub.f32 %v1243_v19, %v16_v34  ;;  %v300_v23 = vsub.f32 %v2574_v56, %v17_v57  ;;  %v301_v22 = vsub.f32 %v2575_v0, %v18_v60  ;;  %v2585_v0 = vld [vmem:[#allocation28_spill] sm:$0xff]  ;;  %v2586_v56 = vld [vmem:[#allocation29_spill] sm:$0xff] }
  0x35   :  { %v229_v61 = vrot.slane %v228_v59, 1  ;;  %v1506_v26 = vmul.f32 %v1017_v42, %v1453_v30  ;;  %v302_v46 = vsub.f32 %v2576_v45, %v19_v63  ;;  %v303_v52 = vsub.f32 %v2577_v47, %v16_v34 }
  0x36   :  { %v304_v24 = vsub.f32 %v2578_v53, %v17_v57  ;;  %v307_v44 = vsub.f32 %v2581_v32, %v16_v34  ;;  %v308_v4 = vsub.f32 %v2582_v43, %v17_v57  ;;  %v309_v49 = vsub.f32 %v2583_v50, %v18_v60 }
  0x37   :  { %v1503_v2 = vadd.f32 %v229_v61, %v228_v59  ;;  %v305_v59 = vsub.f32 %v2579_v48, %v18_v60  ;;  %v2580_v61 = vld [vmem:[#allocation23_spill] sm:$0xff]  ;;  %v310_v45 = vsub.f32 %v2584_v62, %v19_v63  ;;  %v311_v47 = vsub.f32 %v2585_v0, %v16_v34 }
  0x38   :  { %v1526_v25 = vpop.eup %1018  ;;  %v306_v42 = vsub.f32 %v2580_v61, %v19_v63  ;;  %v312_v53 = vsub.f32 %v2586_v56, %v17_v57  ;;  %v313_v48 = vsub.f32 %v2587_v18, %v18_v60  ;;  %v314_v61 = vsub.f32 %v2588_v17, %v19_v63 }
  0x39   :  { %2573 = vst [vmem:[#allocation38_spill] sm:$0xff] %v1503_v2  ;;  %1030 = vrsqrt.f32 %v1503_v2  ;;  %v1532_v12 = vpop.eup %1020  ;;  %v315_v32 = vsub.f32 %v2589_v15, %v16_v34  ;;  %v316_v43 = vsub.f32 %v2590_v14, %v17_v57  ;;  %v317_v50 = vsub.f32 %v1367_v58, %v18_v60 }
  0x3a   :  { %v1538_v19 = vpop.eup %1022  ;;  %v318_v62 = vsub.f32 %v1429_v28, %v19_v63  ;;  %v319_v11 = vmul.f32 %v287_v3, %v287_v3  ;;  %v320_v0 = vmul.f32 %v288_v8, %v288_v8  ;;  %v321_v56 = vmul.f32 %v289_v36, %v289_v36 }
  0x3b   :  { %v1544_v13 = vpop.eup %1024  ;;  %v322_v9 = vmul.f32 %v290_v16, %v290_v16  ;;  %v323_v1 = vmul.f32 %v291_v35, %v291_v35  ;;  %v324_v18 = vmul.f32 %v292_v51, %v292_v51  ;;  %v325_v7 = vmul.f32 %v293_v33, %v293_v33 }
  0x3c   :  { %v1548_v10 = vpop.eup %1026  ;;  %v326_v17 = vmul.f32 %v294_v38, %v294_v38  ;;  %v327_v6 = vmul.f32 %v295_v31, %v295_v31  ;;  %v328_v34 = vmul.f32 %v296_v39, %v296_v39  ;;  %v329_v57 = vmul.f32 %v297_v40, %v297_v40 }
  0x3d   :  { %v330_v14 = vmul.f32 %v298_v29, %v298_v29  ;;  %v331_v5 = vmul.f32 %v299_v20, %v299_v20  ;;  %v332_v60 = vmul.f32 %v300_v23, %v300_v23  ;;  %v333_v58 = vmul.f32 %v301_v22, %v301_v22 }
  0x3e   :  { %v1550_v15 = vpop.eup %1028  ;;  %v334_v63 = vmul.f32 %v302_v46, %v302_v46  ;;  %v335_v3 = vmul.f32 %v303_v52, %v303_v52  ;;  %v336_v8 = vmul.f32 %v304_v24, %v304_v24  ;;  %v337_v28 = vmul.f32 %v305_v59, %v305_v59 }
  0x3f   :  { %v338_v2 = vmul.f32 %v306_v42, %v306_v42  ;;  %v339_v36 = vmul.f32 %v307_v44, %v307_v44  ;;  %v340_v16 = vmul.f32 %v308_v4, %v308_v4  ;;  %v341_v51 = vmul.f32 %v309_v49, %v309_v49 }
  0x40   :  { %v342_v33 = vmul.f32 %v310_v45, %v310_v45  ;;  %v343_v38 = vmul.f32 %v311_v47, %v311_v47  ;;  %v344_v31 = vmul.f32 %v312_v53, %v312_v53  ;;  %v1554_v39 = vmul.f32 %v313_v48, %v313_v48 }
  0x41   :  { %v1556_v40 = vmul.f32 %v314_v61, %v314_v61  ;;  %v1558_v29 = vmul.f32 %v315_v32, %v315_v32  ;;  %v1560_v20 = vmul.f32 %v316_v43, %v316_v43  ;;  %v1562_v23 = vmul.f32 %v317_v50, %v317_v50 }
  0x42   :  { %v1564_v22 = vmul.f32 %v318_v62, %v318_v62  ;;  %v351_v4 = vsel %vm126_vm0, %v319_v11, 0.0  ;;  %v352_v44 = vsel %vm126_vm0, %v320_v0, 0.0  ;;  %v354_v45 = vsel %vm126_vm0, %v321_v56, 0.0 }
  0x43   :  { %v1552_v35 = vpop.eup %1030  ;;  %v353_v49 = vadd.f32 %v352_v44, %v351_v4  ;;  %v356_v46 = vsel %vm126_vm0, %v322_v9, 0.0  ;;  %v364_v47 = vsel %vm126_vm0, %v323_v1, 0.0  ;;  %v365_v32 = vsel %vm126_vm0, %v324_v18, 0.0 }
  0x44   :  { %v367_v43 = vsel %vm126_vm0, %v325_v7, 0.0  ;;  %v369_v50 = vsel %vm126_vm0, %v326_v17, 0.0  ;;  %v377_v62 = vsel %vm126_vm0, %v327_v6, 0.0  ;;  %v366_v53 = vadd.f32 %v365_v32, %v364_v47 }
  0x45   :  { %v355_v52 = vadd.f32 %v354_v45, %v353_v49  ;;  %v378_v11 = vsel %vm126_vm0, %v328_v34, 0.0  ;;  %v380_v0 = vsel %vm126_vm0, %v329_v57, 0.0  ;;  %v382_v56 = vsel %vm126_vm0, %v330_v14, 0.0 }
  0x46   :  { %v379_v24 = vadd.f32 %v378_v11, %v377_v62  ;;  %v390_v9 = vsel %vm126_vm0, %v331_v5, 0.0  ;;  %v391_v1 = vsel %vm126_vm0, %v332_v60, 0.0  ;;  %v368_v48 = vadd.f32 %v367_v43, %v366_v53 }
  0x47   :  { %v357_v18 = vadd.f32 %v356_v46, %v355_v52  ;;  %v392_v7 = vadd.f32 %v391_v1, %v390_v9  ;;  %v393_v17 = vsel %vm126_vm0, %v333_v58, 0.0  ;;  %v395_v6 = vsel %vm126_vm0, %v334_v63, 0.0 }
  0x48   :  { %v381_v59 = vadd.f32 %v380_v0, %v379_v24  ;;  %v403_v61 = vsel %vm126_vm0, %v335_v3, 0.0  ;;  %v404_v42 = vsel %vm126_vm0, %v336_v8, 0.0  ;;  %v370_v57 = vadd.f32 %v369_v50, %v368_v48 }
  0x49   :  { %v358_v34 = vrot.slane %v357_v18, 4  ;;  %v394_v4 = vadd.f32 %v393_v17, %v392_v7  ;;  %v405_v14 = vadd.f32 %v404_v42, %v403_v61  ;;  %v406_v5 = vsel %vm126_vm0, %v337_v28, 0.0 }
  0x4a   :  { %v383_v44 = vadd.f32 %v382_v56, %v381_v59  ;;  %v408_v60 = vsel %vm126_vm0, %v338_v2, 0.0  ;;  %v416_v49 = vsel %vm126_vm0, %v339_v36, 0.0  ;;  %v371_v58 = vrot.slane %v370_v57, 4 }
  0x4b   :  { %v359_v45 = vadd.f32 %v358_v34, %v357_v18  ;;  %v396_v46 = vadd.f32 %v395_v6, %v394_v4  ;;  %v407_v47 = vadd.f32 %v406_v5, %v405_v14  ;;  %v417_v3 = vsel %vm126_vm0, %v340_v16, 0.0 }
  0x4c   :  { %v384_v63 = vrot.slane %v383_v44, 4  ;;  %v419_v8 = vsel %vm126_vm0, %v341_v51, 0.0  ;;  %v421_v32 = vsel %vm126_vm0, %v342_v33, 0.0  ;;  %v372_v50 = vadd.f32 %v371_v58, %v370_v57 }
  0x4d   :  { %v360_v43 = vrot.slane %v359_v45, 2  ;;  %v397_v62 = vrot.slane %v396_v46, 4  ;;  %v409_v52 = vadd.f32 %v408_v60, %v407_v47  ;;  %vm233_vm1 = vcmp.eq.f32.partialorder %v1453_v30, inf }
  0x4e   :  { %vm240_vm2 = vcmp.eq.f32.partialorder %v1456_v27, inf  ;;  %v385_v28 = vadd.f32 %v384_v63, %v383_v44  ;;  %v418_v2 = vadd.f32 %v417_v3, %v416_v49  ;;  %v429_v36 = vsel %vm126_vm0, %v343_v38, 0.0 }
  0x4f   :  { %v430_v53 = vsel %vm126_vm0, %v344_v31, 0.0  ;;  %v361_v11 = vadd.f32 %v360_v43, %v359_v45  ;;  %v373_v16 = vrot.slane %v372_v50, 2  ;;  %v398_v0 = vadd.f32 %v397_v62, %v396_v46 }
  0x50   :  { %v410_v51 = vrot.slane %v409_v52, 4  ;;  %v386_v24 = vrot.slane %v385_v28, 2  ;;  %v420_v33 = vadd.f32 %v419_v8, %v418_v2  ;;  %v431_v56 = vadd.f32 %v430_v53, %v429_v36 }
  0x51   :  { %v432_v9 = vsel %vm126_vm0, %v1554_v39, 0.0  ;;  %v362_v1 = vrot.slane %v361_v11, 1  ;;  %v374_v18 = vadd.f32 %v373_v16, %v372_v50  ;;  %v399_v48 = vrot.slane %v398_v0, 2 }
  0x52   :  { %v411_v7 = vadd.f32 %v410_v51, %v409_v52  ;;  %vm247_vm3 = vcmp.eq.f32.partialorder %v1458_v54, inf  ;;  %v387_v17 = vadd.f32 %v386_v24, %v385_v28  ;;  %v422_v38 = vadd.f32 %v421_v32, %v420_v33 }
  0x53   :  { %v433_v59 = vadd.f32 %v432_v9, %v431_v56  ;;  %v434_v31 = vsel %vm126_vm0, %v1556_v40, 0.0  ;;  %v1599_v6 = vadd.f32 %v362_v1, %v361_v11  ;;  %v375_v61 = vrot.slane %v374_v18, 1 }
  0x54   :  { %v400_v42 = vadd.f32 %v399_v48, %v398_v0  ;;  %v412_v34 = vrot.slane %v411_v7, 2  ;;  %vm254_vm4 = vcmp.eq.f32.partialorder %v1468_v41, inf  ;;  %vm261_vm5 = vcmp.eq.f32.partialorder %v1473_v21, inf  ;;  %v2591_v0 = vld [vmem:[#allocation38_spill] sm:$0xff] }
  0x55   :  { %v388_v39 = vrot.slane %v387_v17, 1  ;;  %v423_v57 = vrot.slane %v422_v38, 4  ;;  %v435_v4 = vadd.f32 %v434_v31, %v433_v59  ;;  %v442_v14 = vsel %vm126_vm0, %v1558_v29, 0.0 }
  0x56   :  { %v239_v44 = vmul.f32 %v1526_v25, %v1456_v27  ;;  %vm268_vm6 = vcmp.eq.f32.partialorder %v1475_v55, inf  ;;  %v401_v40 = vrot.slane %v400_v42, 1  ;;  %v413_v5 = vadd.f32 %v412_v34, %v411_v7 }
  0x57   :  { %v443_v60 = vsel %vm126_vm0, %v1560_v20, 0.0  ;;  %vm235_vm7 = vcmp.eq.f32.partialorder %v1453_v30, 0.0  ;;  %vm275_vm8 = vcmp.eq.f32.partialorder %v1490_v37, inf  ;;  %v1612_v49 = vadd.f32 %v375_v61, %v374_v18 }
  0x58   :  { %v424_v45 = vadd.f32 %v423_v57, %v422_v38  ;;  %v436_v58 = vrot.slane %v435_v4, 4  ;;  %v444_v46 = vadd.f32 %v443_v60, %v442_v14  ;;  %vm242_vm9 = vcmp.eq.f32.partialorder %v1456_v27, 0.0 }
  0x59   :  { %vm249_vm10 = vcmp.eq.f32.partialorder %v1458_v54, 0.0  ;;  %v1616_v25 = vadd.f32 %v388_v39, %v387_v17  ;;  %v414_v29 = vrot.slane %v413_v5, 1  ;;  %v445_v47 = vsel %vm126_vm0, %v1562_v23, 0.0 }
  0x5a   :  { %v447_v20 = vsel %vm126_vm0, %v1564_v22, 0.0  ;;  %vm256_vm11 = vcmp.eq.f32.partialorder %v1468_v41, 0.0  ;;  %vm263_vm12 = vcmp.eq.f32.partialorder %v1473_v21, 0.0  ;;  %vm270_vm13 = vcmp.eq.f32.partialorder %v1475_v55, 0.0 }
  0x5b   :  { %v425_v63 = vrot.slane %v424_v45, 2  ;;  %v437_v3 = vadd.f32 %v436_v58, %v435_v4  ;;  %v446_v8 = vadd.f32 %v445_v47, %v444_v46  ;;  %1032 = vrsqrt.f32 %v1599_v6  ;;  %v22_v58 = vld [vmem:[%s2486_s1 + $0x50] sm:$0xff]  ;;  %v23_v46 = vld [vmem:[%s2486_s1 + $0x58] sm:$0xff] }
  0x5c   :  { %v234_v32 = vsel %vm233_vm1, %v1453_v30, %v1506_v26  ;;  %v241_v23 = vsel %vm240_vm2, %v1456_v27, %v239_v44  ;;  %v246_v22 = vmul.f32 %v1532_v12, %v1458_v54  ;;  %vm277_vm14 = vcmp.eq.f32.partialorder %v1490_v37, 0.0 }
  0x5d   :  { %v1636_v43 = vadd.f32 %v401_v40, %v400_v42  ;;  %v426_v50 = vadd.f32 %v425_v63, %v424_v45  ;;  %v438_v62 = vrot.slane %v437_v3, 2  ;;  %v448_v52 = vadd.f32 %v447_v20, %v446_v8 }
  0x5e   :  { %1034 = vrsqrt.f32 %v1612_v49  ;;  %v253_v28 = vmul.f32 %v1538_v19, %v1468_v41  ;;  %v260_v26 = vmul.f32 %v1544_v13, %v1473_v21  ;;  %v1643_v2 = vadd.f32 %v414_v29, %v413_v5 }
  0x5f   :  { %1036 = vrsqrt.f32 %v1616_v25  ;;  %v267_v12 = vmul.f32 %v1548_v10, %v1475_v55  ;;  %v427_v36 = vrot.slane %v426_v50, 1  ;;  %v439_v53 = vadd.f32 %v438_v62, %v437_v3  ;;  %v2607_v62 = vld [vmem:[#allocation5_spill] sm:$0xff] }
  0x60   :  { %v449_v11 = vrot.slane %v448_v52, 4  ;;  %v248_v16 = vsel %vm247_vm3, %v1458_v54, %v246_v22  ;;  %v274_v19 = vmul.f32 %v1550_v15, %v1490_v37  ;;  %v281_v13 = vmul.f32 %v1552_v35, %v2591_v0 }
  0x61   :  { %vm282_vm15 = vcmp.eq.f32.partialorder %v2591_v0, inf  ;;  %v1656_v51 = vadd.f32 %v427_v36, %v426_v50  ;;  %v440_v24 = vrot.slane %v439_v53, 1  ;;  %1038 = vrsqrt.f32 %v1636_v43  ;;  %v2609_v36 = vld [vmem:[#allocation7_spill] sm:$0xff] }
  0x62   :  { %v450_v33 = vadd.f32 %v449_v11, %v448_v52  ;;  %v255_v10 = vsel %vm254_vm4, %v1468_v41, %v253_v28  ;;  %v262_v56 = vsel %vm261_vm5, %v1473_v21, %v260_v26  ;;  %v285_v15 = vand.u32 2147483648, %v2591_v0  ;;  %v2608_v26 = vld [vmem:[#allocation6_spill] sm:$0xff]  ;;  %v2610_v11 = vld [vmem:[#allocation36_spill] sm:$0xff] }
  0x63   :  { %1040 = vrsqrt.f32 %v1643_v2  ;;  %v269_v35 = vsel %vm268_vm6, %v1475_v55, %v267_v12  ;;  %v1670_v9 = vadd.f32 %v440_v24, %v439_v53  ;;  %v2592_v18 = vand.u32 2147483648, %v1453_v30 }
  0x64   :  { %v451_v1 = vrot.slane %v450_v33, 2  ;;  %1042 = vrsqrt.f32 %v1656_v51  ;;  %v276_v7 = vsel %vm275_vm8, %v1490_v37, %v274_v19  ;;  %v283_v17 = vsel %vm282_vm15, %v2591_v0, %v281_v13 }
  0x65   :  { %v1677_v48 = vsel %vm235_vm7, %v2592_v18, %v234_v32  ;;  %vm284_vm1 = vcmp.eq.f32.partialorder %v2591_v0, 0.0  ;;  %v1033_v38 = vpop.eup %1032  ;;  %v2594_v59 = vand.u32 2147483648, %v1456_v27  ;;  %v2596_v61 = vand.u32 2147483648, %v1458_v54  ;;  %v2612_v0 = vld [vmem:[#allocation9_spill] sm:$0xff] }
  0x66   :  { %2593 = vst [vmem:[#allocation38_spill] sm:$0xff] %v1677_v48  ;;  %v452_v42 = vadd.f32 %v451_v1, %v450_v33  ;;  %1044 = vrsqrt.f32 %v1670_v9  ;;  %v2598_v34 = vand.u32 2147483648, %v1468_v41  ;;  %v2600_v57 = vand.u32 2147483648, %v1473_v21  ;;  %v2616_v1 = vld [vmem:[#allocation12_spill] sm:$0xff] }
  0x67   :  { %v1688_v31 = vsel %vm242_vm9, %v2594_v59, %v241_v23  ;;  %v1694_v30 = vsel %vm249_vm10, %v2596_v61, %v248_v16  ;;  %v2602_v4 = vand.u32 2147483648, %v1475_v55  ;;  %v456_v14 = vmul.f32 %v1033_v38, %v1599_v6  ;;  %v21_v55 = vld [vmem:[%s2486_s1 + $0x48] sm:$0xff]  ;;  %v2611_v16 = vld [vmem:[#allocation8_spill] sm:$0xff] }
  0x68   :  { %2595 = vst [vmem:[#allocation39_spill] sm:$0xff] %v1688_v31  ;;  %2597 = vst [vmem:[#allocation40_spill] sm:$0xff] %v1694_v30  ;;  %v1701_v39 = vsel %vm256_vm11, %v2598_v34, %v255_v10  ;;  %v1707_v27 = vsel %vm263_vm12, %v2600_v57, %v262_v56  ;;  %v1035_v44 = vpop.eup %1034  ;;  %v2604_v40 = vand.u32 2147483648, %v1490_v37  ;;  %v1722_v5 = vsel %vm284_vm1, %v285_v15, %v283_v17  ;;  %v2614_v10 = vld [vmem:[#allocation10_spill] sm:$0xff]  ;;  %v2615_v15 = vld [vmem:[#allocation11_spill] sm:$0xff] }
  0x69   :  { %2599 = vst [vmem:[#allocation41_spill] sm:$0xff] %v1701_v39  ;;  %2601 = vst [vmem:[#allocation42_spill] sm:$0xff] %v1707_v27  ;;  %v1713_v54 = vsel %vm270_vm13, %v2602_v4, %v269_v35  ;;  %v453_v21 = vrot.slane %v452_v42, 1  ;;  %vm457_vm2 = vcmp.eq.f32.partialorder %v1599_v6, inf  ;;  %v1037_v60 = vpop.eup %1036  ;;  %vm459_vm3 = vcmp.eq.f32.partialorder %v1599_v6, 0.0  ;;  %v2618_v17 = vld [vmem:[#allocation13_spill] sm:$0xff] }
  0x6a   :  { %2603 = vst [vmem:[#allocation43_spill] sm:$0xff] %v1713_v54  ;;  %v1720_v41 = vsel %vm277_vm14, %v2604_v40, %v276_v7  ;;  %2606 = vst [vmem:[#allocation45_spill] sm:$0xff] %v1722_v5  ;;  %v460_v45 = vand.u32 2147483648, %v1599_v6  ;;  %vm464_vm4 = vcmp.eq.f32.partialorder %v1612_v49, inf  ;;  %vm471_vm5 = vcmp.eq.f32.partialorder %v1616_v25, inf  ;;  %v2619_v59 = vld [vmem:[#allocation14_spill] sm:$0xff] }
  0x6b   :  { %2605 = vst [vmem:[#allocation44_spill] sm:$0xff] %v1720_v41  ;;  %v1738_v29 = vadd.f32 %v453_v21, %v452_v42  ;;  %v458_v63 = vsel %vm457_vm2, %v1599_v6, %v456_v14  ;;  %v463_v3 = vmul.f32 %v1035_v44, %v1612_v49  ;;  %v1039_v23 = vpop.eup %1038  ;;  %v470_v22 = vmul.f32 %v1037_v60, %v1616_v25  ;;  %v2620_v42 = vld [vmem:[#allocation15_spill] sm:$0xff]  ;;  %v2622_v44 = vld [vmem:[#allocation16_spill] sm:$0xff]  ;;  %v2623_v60 = vld [vmem:[#allocation17_spill] sm:$0xff] }
  0x6c   :  { %v512_v52 = vsub.f32 %v2607_v62, %v21_v55  ;;  %v513_v12 = vsub.f32 %v2608_v26, %v22_v58  ;;  %v514_v53 = vsub.f32 %v2609_v36, %v23_v46  ;;  %v515_v19 = vsub.f32 %v2611_v16, %v2610_v11  ;;  %v2625_v62 = vld [vmem:[#allocation19_spill] sm:$0xff]  ;;  %v2639_v37 = vld [vmem:[#allocation33_spill] sm:$0xff]  ;;  %v2640_v5 = vld [vmem:[#allocation34_spill] sm:$0xff] }
  0x6d   :  { %1046 = vrsqrt.f32 %v1738_v29  ;;  %v1041_v28 = vpop.eup %1040  ;;  %v516_v13 = vsub.f32 %v2612_v0, %v21_v55  ;;  %v1758_v33 = vsel %vm459_vm3, %v460_v45, %v458_v63  ;;  %v517_v56 = vsub.f32 %v2614_v10, %v22_v58  ;;  %v2624_v63 = vld [vmem:[#allocation18_spill] sm:$0xff]  ;;  %v2629_v10 = vld [vmem:[#allocation23_spill] sm:$0xff] }
  0x6e   :  { %v1043_v24 = vpop.eup %1042  ;;  %2613 = vst [vmem:[#allocation5_spill] sm:$0xff] %v1758_v33  ;;  %v518_v35 = vsub.f32 %v2615_v15, %v23_v46  ;;  %v519_v18 = vsub.f32 %v2616_v1, %v2610_v11  ;;  %v1767_v7 = vsel %vm464_vm4, %v1612_v49, %v463_v3  ;;  %v520_v38 = vsub.f32 %v2618_v17, %v21_v55  ;;  %v2628_v0 = vld [vmem:[#allocation22_spill] sm:$0xff] }
  0x6f   :  { %2617 = vst [vmem:[#allocation6_spill] sm:$0xff] %v1767_v7  ;;  %v521_v61 = vsub.f32 %v2619_v59, %v22_v58  ;;  %v522_v6 = vsub.f32 %v2620_v42, %v23_v46  ;;  %v1775_v57 = vsel %vm471_vm5, %v1616_v25, %v470_v22  ;;  %v1778_v4 = vmul.f32 %v1039_v23, %v1636_v43  ;;  %v2626_v22 = vld [vmem:[#allocation20_spill] sm:$0xff]  ;;  %v2627_v23 = vld [vmem:[#allocation21_spill] sm:$0xff] }
  0x70   :  { %v1045_v34 = vpop.eup %1044  ;;  %2621 = vst [vmem:[#allocation7_spill] sm:$0xff] %v1775_v57  ;;  %v1781_v14 = vmul.f32 %v1041_v28, %v1643_v2  ;;  %v523_v40 = vsub.f32 %v2622_v44, %v2610_v11  ;;  %v1786_v21 = vmul.f32 %v1043_v24, %v1656_v51  ;;  %v524_v45 = vsub.f32 %v2623_v60, %v21_v55  ;;  %v2630_v24 = vld [vmem:[#allocation24_spill] sm:$0xff]  ;;  %v2631_v59 = vld [vmem:[#allocation25_spill] sm:$0xff]  ;;  %v2632_v44 = vld [vmem:[#allocation26_spill] sm:$0xff] }
  0x71   :  { %v525_v3 = vsub.f32 %v2624_v63, %v22_v58  ;;  %v526_v26 = vsub.f32 %v2625_v62, %v23_v46  ;;  %v527_v36 = vsub.f32 %v2626_v22, %v2610_v11  ;;  %v528_v16 = vsub.f32 %v2627_v23, %v21_v55  ;;  %v2633_v63 = vld [vmem:[#allocation27_spill] sm:$0xff]  ;;  %v2634_v22 = vld [vmem:[#allocation28_spill] sm:$0xff]  ;;  %v2635_v23 = vld [vmem:[#allocation29_spill] sm:$0xff] }
  0x72   :  { %v529_v28 = vsub.f32 %v2628_v0, %v22_v58  ;;  %v530_v15 = vsub.f32 %v2629_v10, %v23_v46  ;;  %v1797_v1 = vmul.f32 %v1045_v34, %v1670_v9  ;;  %v531_v17 = vsub.f32 %v2630_v24, %v2610_v11  ;;  %v2636_v0 = vld [vmem:[#allocation30_spill] sm:$0xff]  ;;  %v2637_v10 = vld [vmem:[#allocation31_spill] sm:$0xff]  ;;  %v2638_v34 = vld [vmem:[#allocation32_spill] sm:$0xff] }
  0x73   :  { %v532_v42 = vsub.f32 %v2631_v59, %v21_v55  ;;  %v533_v60 = vsub.f32 %v2632_v44, %v22_v58  ;;  %v534_v62 = vsub.f32 %v2633_v63, %v23_v46  ;;  %v535_v50 = vsub.f32 %v2634_v22, %v2610_v11  ;;  %v2641_v44 = vld [vmem:[#allocation35_spill] sm:$0xff]  ;;  %v2642_v63 = vld [vmem:[#allocation37_spill] sm:$0xff] }
  0x74   :  { %v536_v32 = vsub.f32 %v2635_v23, %v21_v55  ;;  %v537_v8 = vsub.f32 %v2636_v0, %v22_v58  ;;  %v538_v20 = vsub.f32 %v2637_v10, %v23_v46  ;;  %v539_v47 = vsub.f32 %v2638_v34, %v2610_v11 }
  0x75   :  { %v540_v24 = vsub.f32 %v2639_v37, %v21_v55  ;;  %v541_v59 = vsub.f32 %v2640_v5, %v22_v58  ;;  %v1814_v54 = vsub.f32 %v2641_v44, %v23_v46  ;;  %v543_v22 = vmul.f32 %v2642_v63, %v2642_v63 }
  0x76   :  { %v544_v27 = vmul.f32 %v512_v52, %v512_v52  ;;  %v545_v23 = vmul.f32 %v513_v12, %v513_v12  ;;  %v546_v10 = vmul.f32 %v514_v53, %v514_v53  ;;  %v547_v39 = vmul.f32 %v515_v19, %v515_v19 }
  0x77   :  { %v1047_v41 = vpop.eup %1046  ;;  %v548_v30 = vmul.f32 %v516_v13, %v516_v13  ;;  %v549_v11 = vmul.f32 %v517_v56, %v517_v56  ;;  %v550_v34 = vmul.f32 %v518_v35, %v518_v35  ;;  %v551_v55 = vmul.f32 %v519_v18, %v519_v18 }
  0x78   :  { %v1819_v0 = vmul.f32 %v1047_v41, %v1738_v29  ;;  %v552_v37 = vmul.f32 %v520_v38, %v520_v38  ;;  %v553_v5 = vmul.f32 %v521_v61, %v521_v61  ;;  %v554_v58 = vmul.f32 %v522_v6, %v522_v6 }
  0x79   :  { %v555_v31 = vmul.f32 %v523_v40, %v523_v40  ;;  %v556_v46 = vmul.f32 %v524_v45, %v524_v45  ;;  %v557_v44 = vmul.f32 %v525_v3, %v525_v3  ;;  %v558_v48 = vmul.f32 %v526_v26, %v526_v26 }
  0x7a   :  { %v559_v33 = vmul.f32 %v527_v36, %v527_v36  ;;  %v560_v63 = vmul.f32 %v528_v16, %v528_v16  ;;  %v561_v52 = vmul.f32 %v529_v28, %v529_v28  ;;  %v562_v12 = vmul.f32 %v530_v15, %v530_v15 }
  0x7b   :  { %v563_v57 = vmul.f32 %v531_v17, %v531_v17  ;;  %v564_v41 = vmul.f32 %v532_v42, %v532_v42  ;;  %v565_v7 = vmul.f32 %v533_v60, %v533_v60  ;;  %v566_v53 = vmul.f32 %v534_v62, %v534_v62 }
  0x7c   :  { %v567_v19 = vmul.f32 %v535_v50, %v535_v50  ;;  %v568_v13 = vmul.f32 %v536_v32, %v536_v32  ;;  %v1821_v56 = vmul.f32 %v537_v8, %v537_v8  ;;  %v1823_v35 = vmul.f32 %v538_v20, %v538_v20 }
  0x7d   :  { %v1825_v18 = vmul.f32 %v539_v47, %v539_v47  ;;  %v1827_v38 = vmul.f32 %v540_v24, %v540_v24  ;;  %v1829_v61 = vmul.f32 %v541_v59, %v541_v59  ;;  %v575_v6 = vsel %vm126_vm0, %v543_v22, 0.0 }
  0x7e   :  { %v576_v40 = vsel %vm126_vm0, %v544_v27, 0.0  ;;  %v578_v45 = vsel %vm126_vm0, %v545_v23, 0.0  ;;  %v580_v50 = vsel %vm126_vm0, %v546_v10, 0.0  ;;  %v588_v8 = vsel %vm126_vm0, %v547_v39, 0.0 }
  0x7f   :  { %v577_v3 = vadd.f32 %v576_v40, %v575_v6  ;;  %v589_v20 = vsel %vm126_vm0, %v548_v30, 0.0  ;;  %v591_v47 = vsel %vm126_vm0, %v549_v11, 0.0  ;;  %v593_v26 = vsel %vm126_vm0, %v550_v34, 0.0 }
  0x80   :  { %v590_v32 = vadd.f32 %v589_v20, %v588_v8  ;;  %v601_v36 = vsel %vm126_vm0, %v551_v55, 0.0  ;;  %v602_v28 = vsel %vm126_vm0, %v552_v37, 0.0  ;;  %v604_v27 = vsel %vm126_vm0, %v553_v5, 0.0 }
  0x81   :  { %v579_v16 = vadd.f32 %v578_v45, %v577_v3  ;;  %v606_v15 = vsel %vm126_vm0, %v554_v58, 0.0  ;;  %v603_v42 = vadd.f32 %v602_v28, %v601_v36  ;;  %v614_v39 = vsel %vm126_vm0, %v555_v31, 0.0 }
  0x82   :  { %v592_v17 = vadd.f32 %v591_v47, %v590_v32  ;;  %v615_v30 = vsel %vm126_vm0, %v556_v46, 0.0  ;;  %v617_v24 = vsel %vm126_vm0, %v557_v44, 0.0  ;;  %v619_v59 = vsel %vm126_vm0, %v558_v48, 0.0 }
  0x83   :  { %v581_v60 = vadd.f32 %v580_v50, %v579_v16  ;;  %v616_v62 = vadd.f32 %v615_v30, %v614_v39  ;;  %v605_v23 = vadd.f32 %v604_v27, %v603_v42  ;;  %v627_v10 = vsel %vm126_vm0, %v559_v33, 0.0 }
  0x84   :  { %v594_v22 = vadd.f32 %v593_v26, %v592_v17  ;;  %v628_v11 = vsel %vm126_vm0, %v560_v63, 0.0  ;;  %v630_v5 = vsel %vm126_vm0, %v561_v52, 0.0  ;;  %v632_v46 = vsel %vm126_vm0, %v562_v12, 0.0 }
  0x85   :  { %v582_v34 = vrot.slane %v581_v60, 4  ;;  %v618_v55 = vadd.f32 %v617_v24, %v616_v62  ;;  %v629_v37 = vadd.f32 %v628_v11, %v627_v10  ;;  %v607_v58 = vadd.f32 %v606_v15, %v605_v23 }
  0x86   :  { %v595_v31 = vrot.slane %v594_v22, 4  ;;  %v640_v6 = vsel %vm126_vm0, %v563_v57, 0.0  ;;  %v641_v45 = vsel %vm126_vm0, %v564_v41, 0.0  ;;  %v643_v63 = vsel %vm126_vm0, %v565_v7, 0.0 }
  0x87   :  { %v583_v44 = vadd.f32 %v582_v34, %v581_v60  ;;  %v620_v40 = vadd.f32 %v619_v59, %v618_v55  ;;  %v631_v48 = vadd.f32 %v630_v5, %v629_v37  ;;  %v608_v33 = vrot.slane %v607_v58, 4 }
  0x88   :  { %v596_v3 = vadd.f32 %v595_v31, %v594_v22  ;;  %v642_v50 = vadd.f32 %v641_v45, %v640_v6  ;;  %v645_v52 = vsel %vm126_vm0, %v566_v53, 0.0  ;;  %vm478_vm6 = vcmp.eq.f32.partialorder %v1636_v43, inf }
  0x89   :  { %v584_v8 = vrot.slane %v583_v44, 2  ;;  %v621_v20 = vrot.slane %v620_v40, 4  ;;  %v633_v32 = vadd.f32 %v632_v46, %v631_v48  ;;  %vm485_vm7 = vcmp.eq.f32.partialorder %v1643_v2, inf }
  0x8a   :  { %v597_v57 = vrot.slane %v596_v3, 2  ;;  %v609_v12 = vadd.f32 %v608_v33, %v607_v58  ;;  %v644_v47 = vadd.f32 %v643_v63, %v642_v50  ;;  %v653_v26 = vsel %vm126_vm0, %v567_v19, 0.0 }
  0x8b   :  { %v585_v41 = vadd.f32 %v584_v8, %v583_v44  ;;  %v622_v36 = vadd.f32 %v621_v20, %v620_v40  ;;  %v634_v16 = vrot.slane %v633_v32, 4  ;;  %v654_v28 = vsel %vm126_vm0, %v568_v13, 0.0 }
  0x8c   :  { %vm492_vm8 = vcmp.eq.f32.partialorder %v1656_v51, inf  ;;  %vm499_vm9 = vcmp.eq.f32.partialorder %v1670_v9, inf  ;;  %v598_v7 = vadd.f32 %v597_v57, %v596_v3  ;;  %v610_v53 = vrot.slane %v609_v12, 2 }
  0x8d   :  { %v646_v27 = vadd.f32 %v645_v52, %v644_v47  ;;  %v655_v15 = vadd.f32 %v654_v28, %v653_v26  ;;  %vm506_vm10 = vcmp.eq.f32.partialorder %v1738_v29, inf  ;;  %v586_v17 = vrot.slane %v585_v41, 1  ;;  %v2643_v26 = vld [vmem:[#allocation6_spill] sm:$0xff] }
  0x8e   :  { %v623_v42 = vrot.slane %v622_v36, 2  ;;  %v635_v39 = vadd.f32 %v634_v16, %v633_v32  ;;  %v656_v19 = vsel %vm126_vm0, %v1821_v56, 0.0  ;;  %vm466_vm11 = vcmp.eq.f32.partialorder %v1612_v49, 0.0 }
  0x8f   :  { %vm473_vm12 = vcmp.eq.f32.partialorder %v1616_v25, 0.0  ;;  %vm480_vm13 = vcmp.eq.f32.partialorder %v1636_v43, 0.0  ;;  %v599_v13 = vrot.slane %v598_v7, 1  ;;  %v611_v30 = vadd.f32 %v610_v53, %v609_v12 }
  0x90   :  { %v647_v60 = vrot.slane %v646_v27, 4  ;;  %v657_v62 = vadd.f32 %v656_v19, %v655_v15  ;;  %vm487_vm14 = vcmp.eq.f32.partialorder %v1643_v2, 0.0  ;;  %vm494_vm15 = vcmp.eq.f32.partialorder %v1656_v51, 0.0  ;;  %v1974_v19 = vld [vmem:[%s2486_s1 + $0x60] sm:$0xff] }
  0x91   :  { %v574_v24 = vmul.f32 %v1814_v54, %v1814_v54  ;;  %v624_v59 = vadd.f32 %v623_v42, %v622_v36  ;;  %v636_v22 = vrot.slane %v635_v39, 2  ;;  %v658_v56 = vsel %vm126_vm0, %v1823_v35, 0.0 }
  0x92   :  { %vm501_vm1 = vcmp.eq.f32.partialorder %v1670_v9, 0.0  ;;  %vm508_vm2 = vcmp.eq.f32.partialorder %v1738_v29, 0.0  ;;  %v1875_v23 = vadd.f32 %v586_v17, %v585_v41  ;;  %v612_v10 = vrot.slane %v611_v30, 1 }
  0x93   :  { %v648_v11 = vadd.f32 %v647_v60, %v646_v27  ;;  %v659_v34 = vadd.f32 %v658_v56, %v657_v62  ;;  %v625_v55 = vrot.slane %v624_v59, 1  ;;  %v637_v37 = vadd.f32 %v636_v22, %v635_v39  ;;  %v1991_v22 = vld [vmem:[%s2486_s1 + $0x70] sm:$0xff]  ;;  %v1996_v56 = vld [vmem:[%s2486_s1 + $0x78] sm:$0xff] }
  0x94   :  { %v666_v5 = vsel %vm126_vm0, %v1825_v18, 0.0  ;;  %v667_v54 = vsel %vm126_vm0, %v1827_v38, 0.0  ;;  %v1881_v31 = vadd.f32 %v599_v13, %v598_v7  ;;  %v1883_v6 = vadd.f32 %v612_v10, %v611_v30  ;;  %v1979_v13 = vld [vmem:[%s2486_s1 + $0x68] sm:$0xff] }
  0x95   :  { %v649_v35 = vrot.slane %v648_v11, 2  ;;  %v660_v58 = vrot.slane %v659_v34, 4  ;;  %v668_v46 = vadd.f32 %v667_v54, %v666_v5  ;;  %v638_v44 = vrot.slane %v637_v37, 1  ;;  %v1080_v5 = vld [vmem:[%s2485_s0] sm:$0xff] }
  0x96   :  { %v669_v40 = vsel %vm126_vm0, %v1829_v61, 0.0  ;;  %v671_v48 = vsel %vm126_vm0, %v574_v24, 0.0  ;;  %1048 = vrsqrt.f32 %v1875_v23  ;;  %v479_v18 = vsel %vm478_vm6, %v1636_v43, %v1778_v4 }
  0x97   :  { %v650_v45 = vadd.f32 %v649_v35, %v648_v11  ;;  %v661_v3 = vadd.f32 %v660_v58, %v659_v34  ;;  %v670_v33 = vadd.f32 %v669_v40, %v668_v46  ;;  %v486_v38 = vsel %vm485_vm7, %v1643_v2, %v1781_v14  ;;  %v1081_v35 = vld [vmem:[%s2485_s0 + $0x8] sm:$0xff] }
  0x98   :  { %v509_v50 = vand.u32 2147483648, %v1738_v29  ;;  %v1898_v61 = vadd.f32 %v625_v55, %v624_v59  ;;  %1050 = vrsqrt.f32 %v1881_v31  ;;  %v493_v32 = vsel %vm492_vm8, %v1656_v51, %v1786_v21 }
  0x99   :  { %v651_v63 = vrot.slane %v650_v45, 1  ;;  %v662_v8 = vrot.slane %v661_v3, 2  ;;  %v672_v20 = vadd.f32 %v671_v48, %v670_v33  ;;  %v500_v4 = vsel %vm499_vm9, %v1670_v9, %v1797_v1  ;;  %v2645_v1 = vld [vmem:[#allocation7_spill] sm:$0xff] }
  0x9a   :  { %v1909_v14 = vadd.f32 %v638_v44, %v637_v37  ;;  %1052 = vrsqrt.f32 %v1883_v6  ;;  %v507_v52 = vsel %vm506_vm10, %v1738_v29, %v1819_v0  ;;  %v2644_v21 = vand.u32 2147483648, %v1612_v49 }
  0x9b   :  { %v1916_v57 = vadd.f32 %v651_v63, %v650_v45  ;;  %v663_v12 = vadd.f32 %v662_v8, %v661_v3  ;;  %v673_v47 = vrot.slane %v672_v20, 4  ;;  %v2646_v36 = vand.u32 2147483648, %v1616_v25  ;;  %v1082_v3 = vld [vmem:[%s2485_s0 + $0x10] sm:$0xff] }
  0x9c   :  { %v1923_v41 = vsel %vm466_vm11, %v2644_v21, %v2643_v26  ;;  %v2647_v0 = vand.u32 2147483648, %v1636_v43  ;;  %1054 = vrsqrt.f32 %v1898_v61  ;;  %v2648_v7 = vand.u32 2147483648, %v1643_v2  ;;  %v1087_v21 = vld [vmem:[%s2485_s0 + $0x38] sm:$0xff] }
  0x9d   :  { %v1930_v16 = vsel %vm473_vm12, %v2646_v36, %v2645_v1  ;;  %v2649_v53 = vand.u32 2147483648, %v1656_v51  ;;  %v664_v27 = vrot.slane %v663_v12, 1  ;;  %v674_v15 = vadd.f32 %v673_v47, %v672_v20  ;;  %v1086_v47 = vld [vmem:[%s2485_s0 + $0x30] sm:$0xff]  ;;  %v1088_v36 = vld [vmem:[%s2485_s0 + $0x40] sm:$0xff] }
  0x9e   :  { %v1936_v28 = vsel %vm480_vm13, %v2647_v0, %v479_v18  ;;  %v1943_v49 = vsel %vm487_vm14, %v2648_v7, %v486_v38  ;;  %v2651_v43 = vand.u32 2147483648, %v1670_v9  ;;  %v1959_v42 = vsel %vm508_vm2, %v509_v50, %v507_v52  ;;  %v1083_v18 = vld [vmem:[%s2485_s0 + $0x18] sm:$0xff]  ;;  %v1084_v50 = vld [vmem:[%s2485_s0 + $0x20] sm:$0xff] }
  0x9f   :  { %v1949_v25 = vsel %vm494_vm15, %v2649_v53, %v493_v32  ;;  %2653 = vst [vmem:[#allocation9_spill] sm:$0xff] %v1959_v42  ;;  %vm681_vm3 = vcmp.eq.f32.partialorder %v1875_v23, inf  ;;  %1056 = vrsqrt.f32 %v1909_v14  ;;  %v1963_v2 = vadd.f32 %v664_v27, %v663_v12  ;;  %v1085_v32 = vld [vmem:[%s2485_s0 + $0x28] sm:$0xff] }
  0xa0   :  { %2650 = vst [vmem:[#allocation36_spill] sm:$0xff] %v1949_v25  ;;  %v1955_v17 = vsel %vm501_vm1, %v2651_v43, %v500_v4  ;;  %v675_v51 = vrot.slane %v674_v15, 2  ;;  %vm683_vm4 = vcmp.eq.f32.partialorder %v1875_v23, 0.0  ;;  %1058 = vrsqrt.f32 %v1916_v57  ;;  %v1049_v29 = vpop.eup %1048 }
  0xa1   :  { %2652 = vst [vmem:[#allocation8_spill] sm:$0xff] %v1955_v17  ;;  %v684_v39 = vand.u32 2147483648, %v1875_v23  ;;  %vm688_vm5 = vcmp.eq.f32.partialorder %v1881_v31, inf  ;;  %vm690_vm6 = vcmp.eq.f32.partialorder %v1881_v31, 0.0  ;;  %v691_v9 = vand.u32 2147483648, %v1881_v31 }
  0xa2   :  { %v676_v30 = vadd.f32 %v675_v51, %v674_v15  ;;  %vm695_vm7 = vcmp.eq.f32.partialorder %v1883_v6, inf  ;;  %vm697_vm8 = vcmp.eq.f32.partialorder %v1883_v6, 0.0  ;;  %1060 = vrsqrt.f32 %v1963_v2  ;;  %v1051_v59 = vpop.eup %1050  ;;  %v1089_v15 = vld [vmem:[%s2485_s0 + $0x48] sm:$0xff]  ;;  %v1090_v51 = vld [vmem:[%s2485_s0 + $0x50] sm:$0xff] }
  0xa3   :  { %v680_v60 = vmul.f32 %v1049_v29, %v1875_v23  ;;  %v698_v62 = vand.u32 2147483648, %v1883_v6  ;;  %vm702_vm9 = vcmp.eq.f32.partialorder %v1898_v61, inf  ;;  %vm709_vm10 = vcmp.eq.f32.partialorder %v1909_v14, inf }
  0xa4   :  { %v677_v10 = vrot.slane %v676_v30, 1  ;;  %vm716_vm11 = vcmp.eq.f32.partialorder %v1916_v57, inf  ;;  %v1053_v34 = vpop.eup %1052  ;;  %v687_v55 = vmul.f32 %v1051_v59, %v1881_v31  ;;  %v2007_v54 = vsub.f32 %v1080_v5, %v1974_v19  ;;  %v1092_v59 = vld [vmem:[%s2485_s0 + $0x60] sm:$0xff] }
  0xa5   :  { %v2013_v58 = vsub.f32 %v1081_v35, %v1979_v13  ;;  %v694_v44 = vmul.f32 %v1053_v34, %v1883_v6  ;;  %vm723_vm12 = vcmp.eq.f32.partialorder %v1963_v2, inf  ;;  %v682_v45 = vsel %vm681_vm3, %v1875_v23, %v680_v60  ;;  %v1094_v35 = vld [vmem:[%s2485_s0 + $0x70] sm:$0xff] }
  0xa6   :  { %v2015_v46 = vadd.f32 %v677_v10, %v676_v30  ;;  %v1055_v48 = vpop.eup %1054  ;;  %v2027_v33 = vsub.f32 %v1082_v3, %v1991_v22  ;;  %v2033_v38 = vsub.f32 %v1083_v18, %v1996_v56  ;;  %v2039_v63 = vsub.f32 %v1084_v50, %v1974_v19  ;;  %v1091_v30 = vld [vmem:[%s2485_s0 + $0x58] sm:$0xff]  ;;  %v1096_v3 = vld [vmem:[%s2485_s0 + $0x80] sm:$0xff] }
  0xa7   :  { %v689_v8 = vsel %vm688_vm5, %v1881_v31, %v687_v55  ;;  %v701_v20 = vmul.f32 %v1055_v48, %v1898_v61  ;;  %v2050_v4 = vsub.f32 %v1085_v32, %v1979_v13  ;;  %v696_v12 = vsel %vm695_vm7, %v1883_v6, %v694_v44  ;;  %v1093_v55 = vld [vmem:[%s2485_s0 + $0x68] sm:$0xff]  ;;  %v1095_v48 = vld [vmem:[%s2485_s0 + $0x78] sm:$0xff]  ;;  %v1098_v32 = vld [vmem:[%s2485_s0 + $0x90] sm:$0xff] }
  0xa8   :  { %1062 = vrsqrt.f32 %v2015_v46  ;;  %v2059_v26 = vsub.f32 %v1086_v47, %v1991_v22  ;;  %v2065_v1 = vsub.f32 %v1087_v21, %v1996_v56  ;;  %v2071_v0 = vsub.f32 %v1088_v36, %v1974_v19  ;;  %v1100_v21 = vld [vmem:[%s2485_s0 + $0xa0] sm:$0xff] }
  0xa9   :  { %v1057_v52 = vpop.eup %1056  ;;  %v2075_v53 = vsel %vm683_vm4, %v684_v39, %v682_v45  ;;  %v2082_v43 = vsub.f32 %v1089_v15, %v1979_v13  ;;  %v2088_v29 = vsub.f32 %v1090_v51, %v1991_v22  ;;  %v2092_v23 = vsel %vm690_vm6, %v691_v9, %v689_v8  ;;  %v1097_v8 = vld [vmem:[%s2485_s0 + $0x88] sm:$0xff]  ;;  %v1102_v15 = vld [vmem:[%s2485_s0 + $0xb0] sm:$0xff] }
  0xaa   :  { %v1059_v7 = vpop.eup %1058  ;;  %2654 = vst [vmem:[#allocation10_spill] sm:$0xff] %v2075_v53  ;;  %v708_v27 = vmul.f32 %v1057_v52, %v1909_v14  ;;  %2655 = vst [vmem:[#allocation11_spill] sm:$0xff] %v2092_v23  ;;  %v746_v60 = vsub.f32 %v1091_v30, %v1996_v56  ;;  %v747_v10 = vsub.f32 %v1092_v59, %v1974_v19  ;;  %vm704_vm13 = vcmp.eq.f32.partialorder %v1898_v61, 0.0 }
  0xab   :  { %v715_v39 = vmul.f32 %v1059_v7, %v1916_v57  ;;  %v2105_v31 = vsel %vm697_vm8, %v698_v62, %v696_v12  ;;  %v2110_v9 = vsel %vm702_vm9, %v1898_v61, %v701_v20  ;;  %v748_v5 = vsub.f32 %v1093_v55, %v1979_v13  ;;  %v1099_v12 = vld [vmem:[%s2485_s0 + $0x98] sm:$0xff]  ;;  %v1101_v7 = vld [vmem:[%s2485_s0 + $0xa8] sm:$0xff] }
  0xac   :  { %v1061_v34 = vpop.eup %1060  ;;  %2656 = vst [vmem:[#allocation12_spill] sm:$0xff] %v2105_v31  ;;  %v749_v44 = vsub.f32 %v1094_v35, %v1991_v22  ;;  %v2123_v6 = vsel %vm709_vm10, %v1909_v14, %v708_v27  ;;  %v750_v45 = vsub.f32 %v1095_v48, %v1996_v56  ;;  %v751_v18 = vsub.f32 %v1096_v3, %v1974_v19  ;;  %v1105_v35 = vld [vmem:[%s2485_s0 + $0xc8] sm:$0xff]  ;;  %v1106_v3 = vld [vmem:[%s2485_s0 + $0xd0] sm:$0xff] }
  0xad   :  { %v722_v62 = vmul.f32 %v1061_v34, %v1963_v2  ;;  %v2137_v50 = vsel %vm716_vm11, %v1916_v57, %v715_v39  ;;  %v752_v20 = vsub.f32 %v1097_v8, %v1979_v13  ;;  %v753_v52 = vsub.f32 %v1098_v32, %v1991_v22  ;;  %v1103_v39 = vld [vmem:[%s2485_s0 + $0xb8] sm:$0xff]  ;;  %v1104_v34 = vld [vmem:[%s2485_s0 + $0xc0] sm:$0xff] }
  0xae   :  { %v754_v47 = vsub.f32 %v1099_v12, %v1996_v56  ;;  %v755_v36 = vsub.f32 %v1100_v21, %v1974_v19  ;;  %v756_v27 = vsub.f32 %v1101_v7, %v1979_v13  ;;  %v757_v51 = vsub.f32 %v1102_v15, %v1991_v22  ;;  %v1108_v12 = vld [vmem:[%s2485_s0 + $0xe0] sm:$0xff]  ;;  %v1109_v7 = vld [vmem:[%s2485_s0 + $0xe8] sm:$0xff] }
  0xaf   :  { %v758_v30 = vsub.f32 %v1103_v39, %v1996_v56  ;;  %v2170_v59 = vsel %vm723_vm12, %v1963_v2, %v722_v62  ;;  %v759_v55 = vsub.f32 %v1104_v34, %v1974_v19  ;;  %v760_v48 = vsub.f32 %v1105_v35, %v1979_v13  ;;  %v1107_v62 = vld [vmem:[%s2485_s0 + $0xd8] sm:$0xff]  ;;  %v1110_v39 = vld [vmem:[%s2485_s0 + $0xf0] sm:$0xff] }
  0xb0   :  { %v761_v8 = vsub.f32 %v1106_v3, %v1991_v22  ;;  %v762_v32 = vsub.f32 %v1107_v62, %v1996_v56  ;;  %v763_v21 = vsub.f32 %v1108_v12, %v1974_v19  ;;  %v764_v15 = vsub.f32 %v1109_v7, %v1979_v13  ;;  %v1111_v3 = vld [vmem:[%s2485_s0 + $0xf8] sm:$0xff]  ;;  %s1136_s0 = smov [#allocation2]  }
  0xb1   :  { %v765_v34 = vsub.f32 %v1110_v39, %v1991_v22  ;;  %v2204_v62 = vsub.f32 %v1111_v3, %v1996_v56  ;;  %v767_v19 = vmul.f32 %v2007_v54, %v2007_v54  ;;  %v768_v13 = vmul.f32 %v2013_v58, %v2013_v58  ;;  %s1002_s26 = sshll.u32 %s1136_s0, 4  ;;  %s1003_s26 = int_to_ptr.vmem [resolvable:$true] %s1002_s26 }
  0xb2   :  { %v1063_v35 = vpop.eup %1062  ;;  %v769_v12 = vmul.f32 %v2027_v33, %v2027_v33  ;;  %v770_v22 = vmul.f32 %v2033_v38, %v2033_v38  ;;  %v771_v39 = vmul.f32 %v2039_v63, %v2039_v63  ;;  %v772_v56 = vmul.f32 %v2050_v4, %v2050_v4  ;;  %s1112_s27 = scalar_lea.vmem %s1003_s26, 512  ;;  %p1117_p1 = scmp.lt.s32.totalorder %s1003_s26, %s1003_s26 }
  0xb3   :  { %v2213_v7 = vmul.f32 %v1063_v35, %v2015_v46  ;;  %v773_v54 = vmul.f32 %v2059_v26, %v2059_v26  ;;  %v774_v58 = vmul.f32 %v2065_v1, %v2065_v1  ;;  %v775_v33 = vmul.f32 %v2071_v0, %v2071_v0  ;;  %p1113_p0 = scmp.ne.s32.totalorder %s1003_s26, %s1112_s27  ;;  %p1118_p2 = scmp.lt.s32.totalorder %s1112_s27, %s1112_s27 }
  0xb4   :  { %v776_v35 = vmul.f32 %v2082_v43, %v2082_v43  ;;  %v777_v38 = vmul.f32 %v2088_v29, %v2088_v29  ;;  %v778_v3 = vmul.f32 %v746_v60, %v746_v60  ;;  %v779_v63 = vmul.f32 %v747_v10, %v747_v10 }
  0xb5   :  { %v780_v40 = vmul.f32 %v748_v5, %v748_v5  ;;  %v781_v37 = vmul.f32 %v749_v44, %v749_v44  ;;  %v782_v4 = vmul.f32 %v750_v45, %v750_v45  ;;  %v783_v11 = vmul.f32 %v751_v18, %v751_v18  ;;  %p1119_p3 = por %p1118_p2, %p1117_p1 }
  0xb6   :  { %v784_v24 = vmul.f32 %v752_v20, %v752_v20  ;;  %v785_v26 = vmul.f32 %v753_v52, %v753_v52  ;;  %v786_v42 = vmul.f32 %v754_v47, %v754_v47  ;;  %v787_v31 = vmul.f32 %v755_v36, %v755_v36 }
  0xb7   :  { %v788_v1 = vmul.f32 %v756_v27, %v756_v27  ;;  %v789_v23 = vmul.f32 %v757_v51, %v757_v51  ;;  %v790_v53 = vmul.f32 %v758_v30, %v758_v30  ;;  %v791_v0 = vmul.f32 %v759_v55, %v759_v55  ;;  %p1120_p4 = pnand %p1119_p3, %p1113_p0 }
  0xb8   :  { %v792_v17 = vmul.f32 %v760_v48, %v760_v48  ;;  %v2231_v25 = vmul.f32 %v761_v8, %v761_v8  ;;  %v2233_v43 = vmul.f32 %v762_v32, %v762_v32  ;;  %v2235_v29 = vmul.f32 %v763_v21, %v763_v21 }
  0xb9   :  { %v2237_v60 = vmul.f32 %v764_v15, %v764_v15  ;;  %v2239_v10 = vmul.f32 %v765_v34, %v765_v34  ;;  %v799_v5 = vsel %vm126_vm0, %v767_v19, 0.0  ;;  %v800_v44 = vsel %vm126_vm0, %v768_v13, 0.0 }
  0xba   :  { %v802_v45 = vsel %vm126_vm0, %v769_v12, 0.0  ;;  %v801_v18 = vadd.f32 %v800_v44, %v799_v5  ;;  %v804_v20 = vsel %vm126_vm0, %v770_v22, 0.0  ;;  %v812_v52 = vsel %vm126_vm0, %v771_v39, 0.0 }
  0xbb   :  { %v813_v47 = vsel %vm126_vm0, %v772_v56, 0.0  ;;  %v815_v27 = vsel %vm126_vm0, %v773_v54, 0.0  ;;  %v817_v51 = vsel %vm126_vm0, %v774_v58, 0.0  ;;  %v825_v30 = vsel %vm126_vm0, %v775_v33, 0.0 }
  0xbc   :  { %v814_v36 = vadd.f32 %v813_v47, %v812_v52  ;;  %v803_v55 = vadd.f32 %v802_v45, %v801_v18  ;;  %v826_v48 = vsel %vm126_vm0, %v776_v35, 0.0  ;;  %v828_v8 = vsel %vm126_vm0, %v777_v38, 0.0 }
  0xbd   :  { %v830_v32 = vsel %vm126_vm0, %v778_v3, 0.0  ;;  %v827_v15 = vadd.f32 %v826_v48, %v825_v30  ;;  %v838_v34 = vsel %vm126_vm0, %v779_v63, 0.0  ;;  %v839_v19 = vsel %vm126_vm0, %v780_v40, 0.0 }
  0xbe   :  { %v816_v21 = vadd.f32 %v815_v27, %v814_v36  ;;  %v805_v13 = vadd.f32 %v804_v20, %v803_v55  ;;  %v840_v12 = vadd.f32 %v839_v19, %v838_v34  ;;  %v841_v22 = vsel %vm126_vm0, %v781_v37, 0.0 }
  0xbf   :  { %v843_v39 = vsel %vm126_vm0, %v782_v4, 0.0  ;;  %v829_v54 = vadd.f32 %v828_v8, %v827_v15  ;;  %v851_v58 = vsel %vm126_vm0, %v783_v11, 0.0  ;;  %v852_v33 = vsel %vm126_vm0, %v784_v24, 0.0 }
  0xc0   :  { %v818_v56 = vadd.f32 %v817_v51, %v816_v21  ;;  %v806_v35 = vrot.slane %v805_v13, 4  ;;  %v842_v38 = vadd.f32 %v841_v22, %v840_v12  ;;  %v853_v3 = vadd.f32 %v852_v33, %v851_v58 }
  0xc1   :  { %v854_v5 = vsel %vm126_vm0, %v785_v26, 0.0  ;;  %v831_v44 = vadd.f32 %v830_v32, %v829_v54  ;;  %v856_v40 = vsel %vm126_vm0, %v786_v42, 0.0  ;;  %v864_v45 = vsel %vm126_vm0, %v787_v31, 0.0 }
  0xc2   :  { %v819_v63 = vrot.slane %v818_v56, 4  ;;  %v807_v37 = vadd.f32 %v806_v35, %v805_v13  ;;  %v844_v18 = vadd.f32 %v843_v39, %v842_v38  ;;  %v855_v4 = vadd.f32 %v854_v5, %v853_v3 }
  0xc3   :  { %v865_v20 = vsel %vm126_vm0, %v788_v1, 0.0  ;;  %v832_v11 = vrot.slane %v831_v44, 4  ;;  %v867_v24 = vsel %vm126_vm0, %v789_v23, 0.0  ;;  %v869_v26 = vsel %vm126_vm0, %v790_v53, 0.0 }
  0xc4   :  { %v820_v52 = vadd.f32 %v819_v63, %v818_v56  ;;  %v866_v47 = vadd.f32 %v865_v20, %v864_v45  ;;  %v808_v36 = vrot.slane %v807_v37, 2  ;;  %v845_v27 = vrot.slane %v844_v18, 4 }
  0xc5   :  { %v857_v51 = vadd.f32 %v856_v40, %v855_v4  ;;  %vm711_vm14 = vcmp.eq.f32.partialorder %v1909_v14, 0.0  ;;  %v833_v31 = vadd.f32 %v832_v11, %v831_v44  ;;  %v877_v55 = vsel %vm126_vm0, %v791_v0, 0.0 }
  0xc6   :  { %v821_v42 = vrot.slane %v820_v52, 2  ;;  %v868_v30 = vadd.f32 %v867_v24, %v866_v47  ;;  %v809_v1 = vadd.f32 %v808_v36, %v807_v37  ;;  %v846_v48 = vadd.f32 %v845_v27, %v844_v18 }
  0xc7   :  { %v858_v8 = vrot.slane %v857_v51, 4  ;;  %v878_v32 = vsel %vm126_vm0, %v792_v17, 0.0  ;;  %vm718_vm15 = vcmp.eq.f32.partialorder %v1916_v57, 0.0  ;;  %vm725_vm1 = vcmp.eq.f32.partialorder %v1963_v2, 0.0 }
  0xc8   :  { %v822_v23 = vadd.f32 %v821_v42, %v820_v52  ;;  %v834_v53 = vrot.slane %v833_v31, 2  ;;  %v870_v21 = vadd.f32 %v869_v26, %v868_v30  ;;  %v879_v15 = vadd.f32 %v878_v32, %v877_v55 }
  0xc9   :  { %vm730_vm2 = vcmp.eq.f32.partialorder %v2015_v46, inf  ;;  %v810_v34 = vrot.slane %v809_v1, 1  ;;  %v847_v19 = vrot.slane %v846_v48, 2  ;;  %v859_v13 = vadd.f32 %v858_v8, %v857_v51 }
  0xca   :  { %v880_v0 = vsel %vm126_vm0, %v2231_v25, 0.0  ;;  %v823_v12 = vrot.slane %v822_v23, 1  ;;  %v835_v22 = vadd.f32 %v834_v53, %v833_v31  ;;  %v871_v39 = vrot.slane %v870_v21, 4 }
  0xcb   :  { %v881_v17 = vadd.f32 %v880_v0, %v879_v15  ;;  %v798_v56 = vmul.f32 %v2204_v62, %v2204_v62  ;;  %v848_v54 = vadd.f32 %v847_v19, %v846_v48  ;;  %v860_v58 = vrot.slane %v859_v13, 2 }
  0xcc   :  { %v882_v33 = vsel %vm126_vm0, %v2233_v43, 0.0  ;;  %v2278_v35 = vadd.f32 %v810_v34, %v809_v1  ;;  %v836_v38 = vrot.slane %v835_v22, 1  ;;  %v872_v3 = vadd.f32 %v871_v39, %v870_v21 }
  0xcd   :  { %v883_v5 = vadd.f32 %v882_v33, %v881_v17  ;;  %v849_v63 = vrot.slane %v848_v54, 1  ;;  %v861_v44 = vadd.f32 %v860_v58, %v859_v13  ;;  %v890_v25 = vsel %vm126_vm0, %v2235_v29, 0.0  ;;  %v2662_v58 = vld [vmem:[#allocation38_spill] sm:$0xff] }
  0xce   :  { %v891_v40 = vsel %vm126_vm0, %v2237_v60, 0.0  ;;  %v2284_v45 = vadd.f32 %v823_v12, %v822_v23  ;;  %v873_v62 = vrot.slane %v872_v3, 2  ;;  %v2286_v4 = vadd.f32 %v836_v38, %v835_v22  ;;  %v2663_v38 = vld [vmem:[#allocation39_spill] sm:$0xff] }
  0xcf   :  { %v884_v37 = vrot.slane %v883_v5, 4  ;;  %v892_v18 = vadd.f32 %v891_v40, %v890_v25  ;;  %v862_v43 = vrot.slane %v861_v44, 1  ;;  %v893_v20 = vsel %vm126_vm0, %v2239_v10, 0.0  ;;  %v2665_v40 = vld [vmem:[#allocation41_spill] sm:$0xff] }
  0xd0   :  { %v895_v52 = vsel %vm126_vm0, %v798_v56, 0.0  ;;  %v874_v11 = vadd.f32 %v873_v62, %v872_v3  ;;  %1064 = vrsqrt.f32 %v2278_v35  ;;  %v2657_v29 = vand.u32 2147483648, %v1898_v61 }
  0xd1   :  { %v885_v47 = vadd.f32 %v884_v37, %v883_v5  ;;  %v894_v24 = vadd.f32 %v893_v20, %v892_v18  ;;  %v2658_v36 = vand.u32 2147483648, %v1909_v14  ;;  %v733_v27 = vand.u32 2147483648, %v2015_v46  ;;  %v2667_v20 = vld [vmem:[#allocation36_spill] sm:$0xff] }
  0xd2   :  { %v2297_v60 = vsel %vm704_vm13, %v2657_v29, %v2110_v9  ;;  %v2307_v51 = vadd.f32 %v849_v63, %v848_v54  ;;  %v875_v26 = vrot.slane %v874_v11, 1  ;;  %1066 = vrsqrt.f32 %v2284_v45  ;;  %v2661_v54 = vld [vmem:[#allocation5_spill] sm:$0xff] }
  0xd3   :  { %v2304_v10 = vsel %vm711_vm14, %v2658_v36, %v2123_v6  ;;  %v886_v42 = vrot.slane %v885_v47, 2  ;;  %v896_v31 = vadd.f32 %v895_v52, %v894_v24  ;;  %v2659_v61 = vand.u32 2147483648, %v1916_v57  ;;  %v2668_v52 = vld [vmem:[#allocation43_spill] sm:$0xff]  ;;  %v2670_v24 = vld [vmem:[#allocation44_spill] sm:$0xff] }
  0xd4   :  { %v2660_v14 = vand.u32 2147483648, %v1963_v2  ;;  %v2324_v30 = vadd.f32 %v862_v43, %v861_v44  ;;  %1068 = vrsqrt.f32 %v2286_v4  ;;  %v2331_v55 = vsel %vm730_vm2, %v2015_v46, %v2213_v7  ;;  %v2664_v44 = vld [vmem:[#allocation40_spill] sm:$0xff] }
  0xd5   :  { %v2315_v9 = vsel %vm718_vm15, %v2659_v61, %v2137_v50  ;;  %v2333_v57 = vadd.f32 %v875_v26, %v874_v11  ;;  %v887_v50 = vadd.f32 %v886_v42, %v885_v47  ;;  %v897_v1 = vrot.slane %v896_v31, 4  ;;  %v2669_v47 = vld [vmem:[#allocation8_spill] sm:$0xff]  ;;  %v2671_v42 = vld [vmem:[#allocation10_spill] sm:$0xff]  ;;  %v2672_v61 = vld [vmem:[#allocation11_spill] sm:$0xff] }
  0xd6   :  { %v2322_v6 = vsel %vm725_vm1, %v2660_v14, %v2170_v59  ;;  %vm905_vm0 = vcmp.eq.f32.partialorder %v2278_v35, inf  ;;  %vm907_vm3 = vcmp.eq.f32.partialorder %v2278_v35, 0.0  ;;  %v908_v2 = vand.u32 2147483648, %v2278_v35 }
  0xd7   :  { %1070 = vrsqrt.f32 %v2307_v51  ;;  %v888_v59 = vrot.slane %v887_v50, 1  ;;  %v898_v48 = vadd.f32 %v897_v1, %v896_v31  ;;  %vm912_vm4 = vcmp.eq.f32.partialorder %v2284_v45, inf }
  0xd8   :  { %vm914_vm5 = vcmp.eq.f32.partialorder %v2284_v45, 0.0  ;;  %v915_v7 = vand.u32 2147483648, %v2284_v45  ;;  %vm919_vm6 = vcmp.eq.f32.partialorder %v2286_v4, inf  ;;  %vm921_vm7 = vcmp.eq.f32.partialorder %v2286_v4, 0.0 }
  0xd9   :  { %1072 = vrsqrt.f32 %v2324_v30  ;;  %v2345_v8 = vadd.f32 %v888_v59, %v887_v50  ;;  %v899_v32 = vrot.slane %v898_v48, 2  ;;  %v922_v23 = vand.u32 2147483648, %v2286_v4 }
  0xda   :  { %1074 = vrsqrt.f32 %v2333_v57  ;;  %vm926_vm8 = vcmp.eq.f32.partialorder %v2307_v51, inf  ;;  %vm928_vm9 = vcmp.eq.f32.partialorder %v2307_v51, 0.0  ;;  %v929_v53 = vand.u32 2147483648, %v2307_v51  ;;  %v1065_v21 = vpop.eup %1064 }
  0xdb   :  { %vm933_vm10 = vcmp.eq.f32.partialorder %v2324_v30, inf  ;;  %v900_v15 = vadd.f32 %v899_v32, %v898_v48  ;;  %vm935_vm11 = vcmp.eq.f32.partialorder %v2324_v30, 0.0  ;;  %v936_v34 = vand.u32 2147483648, %v2324_v30 }
  0xdc   :  { %1076 = vrsqrt.f32 %v2345_v8  ;;  %vm959_vm12 = vcmask 1040384   ;;  %v904_v19 = vmul.f32 %v1065_v21, %v2278_v35  ;;  %vm940_vm13 = vcmp.eq.f32.partialorder %v2333_v57, inf  ;;  %v1067_v0 = vpop.eup %1066 }
  0xdd   :  { %vm942_vm14 = vcmp.eq.f32.partialorder %v2333_v57, 0.0  ;;  %v943_v13 = vand.u32 2147483648, %v2333_v57  ;;  %v901_v12 = vrot.slane %v900_v15, 1  ;;  %v950_v22 = vand.u32 2147483648, %v2345_v8 }
  0xde   :  { %vm968_vm1 = vcmask 1041408   ;;  %v1069_v39 = vpop.eup %1068  ;;  %v906_v17 = vsel %vm905_vm0, %v2278_v35, %v904_v19  ;;  %v911_v56 = vmul.f32 %v1067_v0, %v2284_v45  ;;  %vm949_vm2 = vcmp.eq.f32.partialorder %v2345_v8, 0.0  ;;  %v2673_v35 = vld [vmem:[#allocation12_spill] sm:$0xff] }
  0xdf   :  { %v960_v33 = vsel %vm959_vm12, %v2662_v58, %v2661_v54  ;;  %v961_v3 = vsel %vm959_vm12, %v2663_v38, %v1923_v41  ;;  %vm732_vm15 = vcmp.eq.f32.partialorder %v2015_v46, 0.0  ;;  %v2374_v5 = vadd.f32 %v901_v12, %v900_v15  ;;  %v2666_v41 = vld [vmem:[#allocation42_spill] sm:$0xff] }
  0xe0   :  { %v918_v63 = vmul.f32 %v1069_v39, %v2286_v4  ;;  %v962_v25 = vsel %vm959_vm12, %v2664_v44, %v1930_v16  ;;  %v963_v62 = vsel %vm959_vm12, %v2665_v40, %v1936_v28  ;;  %v913_v18 = vsel %vm912_vm4, %v2284_v45, %v911_v56  ;;  %v2676_v56 = vld [vmem:[#allocation45_spill] sm:$0xff] }
  0xe1   :  { %v1071_v37 = vpop.eup %1070  ;;  %v964_v43 = vsel %vm959_vm12, %v2666_v41, %v1943_v49  ;;  %v965_v11 = vsel %vm959_vm12, %v2668_v52, %v2667_v20  ;;  %v966_v16 = vsel %vm959_vm12, %v2670_v24, %v2669_v47  ;;  %v909_v28 = vsel %vm907_vm3, %v908_v2, %v906_v17  ;;  %v2675_v17 = vld [vmem:[#allocation9_spill] sm:$0xff] }
  0xe2   :  { %v920_v29 = vsel %vm919_vm6, %v2286_v4, %v918_v63  ;;  %v925_v36 = vmul.f32 %v1071_v37, %v2307_v51  ;;  %1078 = vrsqrt.f32 %v2374_v5  ;;  %v916_v26 = vsel %vm914_vm5, %v915_v7, %v913_v18 }
  0xe3   :  { %v1073_v49 = vpop.eup %1072  ;;  %v969_v31 = vsel %vm968_vm1, %v960_v33, %v2671_v42  ;;  %v970_v14 = vsel %vm968_vm1, %v961_v3, %v2672_v61  ;;  %v971_v50 = vsel %vm968_vm1, %v962_v25, %v2673_v35  ;;  %v923_v2 = vsel %vm921_vm7, %v922_v23, %v920_v29 }
  0xe4   :  { %v1075_v1 = vpop.eup %1074  ;;  %v927_v59 = vsel %vm926_vm8, %v2307_v51, %v925_v36  ;;  %v932_v45 = vmul.f32 %v1073_v49, %v2324_v30  ;;  %v972_v48 = vsel %vm968_vm1, %v963_v62, %v2297_v60  ;;  %v973_v21 = vsel %vm968_vm1, %v964_v43, %v2304_v10 }
  0xe5   :  { %v930_v7 = vsel %vm928_vm9, %v929_v53, %v927_v59  ;;  %v939_v32 = vmul.f32 %v1075_v1, %v2333_v57  ;;  %v974_v4 = vsel %vm968_vm1, %v965_v11, %v2315_v9  ;;  %v975_v19 = vsel %vm968_vm1, %v966_v16, %v2322_v6 }
  0xe6   :  { %v1077_v23 = vpop.eup %1076  ;;  %v934_v15 = vsel %vm933_vm10, %v2324_v30, %v932_v45  ;;  %vm977_vm0 = vcmask 1042432   ;;  %vm988_vm3 = vcmask 60416   ;;  %vm2674_vm4 = vcmp.eq.f32.partialorder %v2345_v8, inf }
  0xe7   :  { %v937_v60 = vsel %vm935_vm11, %v936_v34, %v934_v15  ;;  %v941_v10 = vsel %vm940_vm13, %v2333_v57, %v939_v32  ;;  %v946_v51 = vmul.f32 %v1077_v23, %v2345_v8  ;;  %v978_v9 = vsel %vm977_vm0, %v969_v31, %v909_v28 }
  0xe8   :  { %v944_v53 = vsel %vm942_vm14, %v943_v13, %v941_v10  ;;  %v979_v0 = vsel %vm977_vm0, %v970_v14, %v916_v26  ;;  %v980_v6 = vsel %vm977_vm0, %v971_v50, %v923_v2  ;;  %v981_v12 = vsel %vm977_vm0, %v972_v48, %v930_v7  ;;  %989 = vst.msk [vmem:[#allocation2] sm:$0xf] %vm988_vm3, %v978_v9 }
  0xe9   :  { %v948_v30 = vsel %vm2674_vm4, %v2345_v8, %v946_v51  ;;  %v982_v34 = vsel %vm977_vm0, %v973_v21, %v937_v60  ;;  %v983_v39 = vsel %vm977_vm0, %v974_v4, %v944_v53  ;;  %990 = vst.msk [vmem:[#allocation2 + $0x4] sm:$0xf] %vm988_vm3, %v979_v0  ;;  %991 = vst.msk [vmem:[#allocation2 + $0x8] sm:$0xf] %vm988_vm3, %v980_v6  ;;  %vm954_vm5 = vcmp.eq.f32.partialorder %v2374_v5, inf }
  0xea   :  { %992 = vst.msk [vmem:[#allocation2 + $0xc] sm:$0xf] %vm988_vm3, %v981_v12  ;;  %v951_v57 = vsel %vm949_vm2, %v950_v22, %v948_v30  ;;  %993 = vst.msk [vmem:[#allocation2 + $0x10] sm:$0xf] %vm988_vm3, %v982_v34  ;;  %v734_v13 = vsel %vm732_vm15, %v733_v27, %v2331_v55  ;;  %v967_v54 = vsel %vm959_vm12, %v2676_v56, %v2675_v17  ;;  %v957_v8 = vand.u32 2147483648, %v2374_v5 }
  0xeb   :  { %994 = vst.msk [vmem:[#allocation2 + $0x14] sm:$0xf] %vm988_vm3, %v983_v39  ;;  %v984_v58 = vsel %vm977_vm0, %v975_v19, %v951_v57  ;;  %vm956_vm6 = vcmp.eq.f32.partialorder %v2374_v5, 0.0  ;;  %v976_v46 = vsel %vm968_vm1, %v967_v54, %v734_v13 }
  0xec   :  { %v1079_v33 = vpop.eup %1078  ;;  %995 = vst.msk [vmem:[#allocation2 + $0x18] sm:$0xf] %vm988_vm3, %v984_v58 }
  0xed   :  { %v953_v22 = vmul.f32 %v1079_v33, %v2374_v5 }
  0xef   :  { %v955_v27 = vsel %vm954_vm5, %v2374_v5, %v953_v22 }
  0xf0   :  { %v958_v55 = vsel %vm956_vm6, %v957_v8, %v955_v27 }
  0xf1   :  { %v985_v38 = vsel %vm977_vm0, %v976_v46, %v958_v55 }
  0xf2   :  { %996 = vst.msk [vmem:[#allocation2 + $0x1c] sm:$0xf] %vm988_vm3, %v985_v38 }
  0xf3   :  { %1123 = shalt.err (!%p1120_p4)
}
  0xf4   :  { %s1124_s30 = scalar_lea.hbm %s2487_s2, 512 }
  0xf5   :  { %p1125_p5 = scmp.ne.s32.totalorder %s2487_s2, %s1124_s30  ;;  %p1128_p6 = scmp.lt.u32.totalorder %s1124_s30, %s2487_s2 }
  0xf7   :  { %p1130_p7 = pnand %p1128_p6, %p1125_p5 }
  0xf9   :  { %1133 = shalt.err (!%p1130_p7)
}
  0xfa   :  { %s1137_s7 = smov 64   ;;  %s1138_s8 = smov 4  }
  0xfb   :  { %1008 = dma.vmem_to_hbm [thread:$0]  %s1003_s26, 512, %s2487_s2, [#allocation3], %s1137_s7, %s1137_s7, %s1138_s8  }
  0xfc   :  { %1134 = dma.done.wait [#allocation3], 512  }
  0xfd   :  { %1135 = vsyncadd [#allocation3], 4294966784 }
  0xfe   :  { %1012 = vsyncpa [#allocation3], 1 }

</bundles_post_ra>
